<compile_context>
chip_gen: v5e
topology: v5e:2x2
jax: 0.10.0
libtpu: 0.0.40
codegen_flags: <defaults>
</compile_context>

<pallas_src>
import functools

import jax
import jax.numpy as jnp
from jax.experimental import pallas as pl
from jax.experimental.pallas import tpu as pltpu


# ----------------------------------------------------------------------------
# VMEM budgeting (generation-aware)
# ----------------------------------------------------------------------------
def _vmem_limit_bytes():
    """Scoped VMEM limit: ~75% of physical, capped at 100 MiB.

    v5e/v6e (128 MiB physical) -> 96 MiB; v7x (64 MiB physical) -> 48 MiB.
    """
    try:
        phys = int(pltpu.get_tpu_info().vmem_capacity_bytes)
    except Exception:          # query unavailable -> assume the smallest (v7x) VMEM
        phys = 64 * 1024 * 1024
    return min(int(phys * 0.75), 100 * 1024 * 1024)


def _pick_block_batch(B, N, Din, H, O_pad, in_bytes, vmem_limit):
    """VMEM-byte-budget-driven batch block (replaces the old fixed row cap)."""
    budget = int(vmem_limit * 0.55)                      # headroom for weights / regalloc
    per_graph = (2 * (N * Din + N * N) * in_bytes        # double-buffered feature+support
                 + 2 * N * 4                             # double-buffered mask
                 + 2 * (N * H * 4 + O_pad * 4)           # double-buffered emb + logit out
                 + N * 2 * H * in_bytes                  # [a|x] pack scratch
                 + 14 * N * H * 4)                       # live f32 intermediates (rough)
    bt = max(1, budget // max(per_graph, 1))
    if bt < B:
        bt = max(8, (bt // 8) * 8)   # keep (bt, O_pad) output blocks sublane-aligned
    bt = min(bt, B)
    # Keep the grid >= 2 steps for larger batches so a dual-TensorCore chip (v7x) can
    # shard the 'parallel' axis; negligible cost on single-core chips.
    if B >= 16:
        bt = min(bt, max(8, (((B + 1) // 2) // 8) * 8))
    return bt


# ----------------------------------------------------------------------------
# Fused GNN kernel: encode + GGNN (GRU) propagation + readout, one batch block / step.
# ----------------------------------------------------------------------------
def gnn_kernel(feat_ref, sup_ref, mask_ref,
               we_ref, be_ref, wg_ref, bg_ref, wxh_ref,
               watt_ref, batt_ref, wemb_ref, bemb_ref, wmlp_ref, bmlp_ref,
               emb_ref, out_ref, ax_ref, *, gru_step):
    bt, n, _ = feat_ref.shape
    h = wxh_ref.shape[0]
    cdt = feat_ref.dtype                               # MXU operand dtype (f32 or bf16)
    f32 = jnp.float32

    # --- hoisted loads / broadcasts (outside the unrolled GRU loop) ---------
    feat2 = feat_ref[...].reshape(bt * n, -1)          # (Bt*N, Din)
    sup = sup_ref[...].astype(f32)                     # (Bt, N, N)
    msk3 = mask_ref[...].astype(f32)                   # (Bt, N, 1)
    msk2 = msk3.reshape(bt * n, 1)
    msk_h = jnp.broadcast_to(msk2, (bt * n, h))        # hoisted lane-broadcast

    we = we_ref[...]                                   # (Din, H)
    wg = wg_ref[...]                                   # (2H, 3H)  [[Wa_z|Wa_r|Wa_h],[Wx_z|Wx_r|0]]
    wxh = wxh_ref[...]                                 # (H, H)
    be = be_ref[...].astype(f32)                       # (1, H)
    bg = bg_ref[...].astype(f32)                       # (1, 3H)   all gate biases folded

    # --- encode: x = mask * tanh(feature @ W_enc + b_enc)  (dropout == identity)
    enc = jnp.dot(feat2, we, preferred_element_type=f32) + be
    x_f32 = msk_h * jnp.tanh(enc)                      # f32 state (Bt*N, H)
    x = x_f32.astype(cdt)                              # MXU operand

    # --- GGNN propagation, statically unrolled (gru_step is a small python int) ------
    # TODO(synk): for large gru_step switch to lax.fori_loop(..., unroll=True) to bound
    # vreg live ranges; for gru_step<=4 the static unroll is fine.
    for _ in range(gru_step):
        x3 = x_f32.reshape(bt, n, h)
        if n <= 16:
            # message passing as an unrolled VPU FMA chain over the (tiny) neighbor axis
            # (avoids Bt 8x8xH MXU calls at <5% utilization).
            a3 = sup[:, :, 0:1] * x3[:, 0:1, :]
            for m in range(1, n):
                a3 = a3 + sup[:, :, m:m + 1] * x3[:, m:m + 1, :]
        else:
            a3 = jnp.einsum("bnm,bmh->bnh", sup, x3, preferred_element_type=f32)
        a = a3.reshape(bt * n, h)                      # (Bt*N, H), f32

        # pack [a | x] into a VMEM scratch -> ONE fused gate matmul with K = 2H
        ax_ref[:, 0:h] = a.astype(cdt)
        ax_ref[:, h:2 * h] = x
        g = jnp.dot(ax_ref[...], wg, preferred_element_type=f32) + bg   # (Bt*N, 3H)

        z = jax.nn.sigmoid(g[:, 0:h])                                   # update gate
        r = jax.nn.sigmoid(g[:, h:2 * h])                               # reset gate
        rx = (r * x_f32).astype(cdt)
        hpre = g[:, 2 * h:3 * h] + jnp.dot(rx, wxh, preferred_element_type=f32)
        hcand = jnp.tanh(msk_h * hpre)                                  # candidate state

        x_f32 = hcand * z + x_f32 * (1.0 - z)
        x = x_f32.astype(cdt)

    # --- store embeddings -----------------------------------------------------------
    x3 = x_f32.reshape(bt, n, h)
    emb_ref[...] = x3.astype(emb_ref.dtype)

    # --- fused readout epilogue (same VMEM-resident block, no HBM round-trip) --------
    # attention: sigmoid(<x, w_att>) as a lane reduction (avoids a lane-width-1 matmul)
    att = jax.nn.sigmoid(
        jnp.sum(x3 * watt_ref[...].astype(f32), axis=-1, keepdims=True)
        + batt_ref[...].astype(f32))                   # (Bt, N, 1)

    e = jnp.tanh(
        jnp.dot(x, wemb_ref[...], preferred_element_type=f32)
        + bemb_ref[...].astype(f32)).reshape(bt, n, h)

    n_nodes = jnp.maximum(jnp.sum(msk3, axis=1), 1.0)  # (Bt, 1), guarded vs all-padded
    inv_n = pl.reciprocal(n_nodes, approx=True)        # EUP slot, ~free
    neg = (msk3 - 1.0) * 1e9                           # -1e9 on padded nodes
    gph = msk3 * att * e                               # (Bt, N, H)
    g_pool = jnp.sum(gph, axis=1) * inv_n + jnp.max(gph + neg, axis=1)   # (Bt, H)

    # logits into a lane-dense 128-padded slab -> unmasked stores
    out_ref[...] = (jnp.dot(g_pool.astype(cdt), wmlp_ref[...],
                            preferred_element_type=f32)
                    + bmlp_ref[...].astype(f32)).astype(out_ref.dtype)


# ----------------------------------------------------------------------------
# GNN wrapper (same signature as the PyTorch module's forward)
# ----------------------------------------------------------------------------
def gnn_forward(feature, root, rootindex, support, mask, params, gru_step,
                compute_dtype=jnp.float32, block_batch=None):
    # compute_dtype=jnp.bfloat16 is recommended on v5e/v6e/v7x for MXU throughput and
    # half the HBM bytes on `support`; gate math / accumulation stays f32.  Default f32
    # keeps exact parity with the reference here.
    B, N, Din = feature.shape
    gp, rp = params["graph"], params["readout"]
    H = gp["enc_w"].shape[1]
    O = rp["mlp_w"].shape[1]
    O_pad = ((O + 127) // 128) * 128
    cdt = compute_dtype
    in_bytes = jnp.dtype(cdt).itemsize

    # fused GRU gate weight / bias, built once outside the kernel
    wg = jnp.concatenate(
        [gp["gru_wa"],                                                    # a-path rows
         jnp.concatenate([gp["gru_wx_zr"],
                          jnp.zeros((H, H), gp["gru_wx_zr"].dtype)], axis=1)],  # x-path
        axis=0)                                                           # (2H, 3H)
    bg = gp["gru_ba"] + jnp.concatenate([gp["gru_bx_zr"], gp["gru_bx_h"]], axis=1)

    # pad the MLP to a lane-dense (H, O_pad) slab (zero columns, sliced off below)
    mlp_w = jnp.pad(rp["mlp_w"], ((0, 0), (0, O_pad - O)))
    mlp_b = jnp.pad(rp["mlp_b"], ((0, 0), (0, O_pad - O)))

    vmem_limit = _vmem_limit_bytes()
    bt = _pick_block_batch(B, N, Din, H, O_pad, in_bytes, vmem_limit)
    if block_batch is not None:
        bt = max(1, min(block_batch, B))

    kernel = functools.partial(gnn_kernel, gru_step=gru_step)
    embeddings, out_padded = pl.pallas_call(
        kernel,
        out_shape=(jax.ShapeDtypeStruct((B, N, H), jnp.float32),
                   jax.ShapeDtypeStruct((B, O_pad), jnp.float32)),
        grid_spec=pltpu.PrefetchScalarGridSpec(
            num_scalar_prefetch=0,
            grid=(pl.cdiv(B, bt),),
            in_specs=[
                pl.BlockSpec((bt, N, Din), lambda b: (b, 0, 0)),   # feature
                pl.BlockSpec((bt, N, N), lambda b: (b, 0, 0)),     # support
                pl.BlockSpec((bt, N, 1), lambda b: (b, 0, 0)),     # mask
                pl.BlockSpec((Din, H), lambda b: (0, 0)),          # encode weight
                pl.BlockSpec((1, H), lambda b: (0, 0)),            # encode bias
                pl.BlockSpec((2 * H, 3 * H), lambda b: (0, 0)),    # fused GRU gate weight
                pl.BlockSpec((1, 3 * H), lambda b: (0, 0)),        # fused GRU gate bias
                pl.BlockSpec((H, H), lambda b: (0, 0)),            # GRU weight on (r*x)
                pl.BlockSpec((1, 1, H), lambda b: (0, 0, 0)),      # attention weight (row)
                pl.BlockSpec((1, 1, 1), lambda b: (0, 0, 0)),      # attention bias
                pl.BlockSpec((H, H), lambda b: (0, 0)),            # readout emb weight
                pl.BlockSpec((1, H), lambda b: (0, 0)),            # readout emb bias
                pl.BlockSpec((H, O_pad), lambda b: (0, 0)),        # mlp weight (padded)
                pl.BlockSpec((1, O_pad), lambda b: (0, 0)),        # mlp bias (padded)
            ],
            out_specs=[
                pl.BlockSpec((bt, N, H), lambda b: (b, 0, 0)),     # embeddings
                pl.BlockSpec((bt, O_pad), lambda b: (b, 0)),       # lane-dense logits
            ],
            scratch_shapes=[pltpu.VMEM((bt * N, 2 * H), cdt)],     # [a|x] pack buffer
        ),
        compiler_params=pltpu.CompilerParams(
            dimension_semantics=("parallel",),
            vmem_limit_bytes=vmem_limit),
    )(feature.astype(cdt), support.astype(cdt), mask,
      gp["enc_w"].astype(cdt), gp["enc_b"],
      wg.astype(cdt), bg, gp["gru_wx_h"].astype(cdt),
      rp["att_w"], rp["att_b"],
      rp["emb_w"].astype(cdt), rp["emb_b"],
      mlp_w.astype(cdt), mlp_b)

    outputs = out_padded[:, :O]
    return outputs, embeddings


# ----------------------------------------------------------------------------
# Deterministic parameter init (glorot uniform weights, zero biases).
# ----------------------------------------------------------------------------
def glorot(key, shape):
    fan_in, fan_out = shape[-2], shape[-1]
    limit = (6.0 / (fan_in + fan_out)) ** 0.5
    return jax.random.uniform(key, shape, jnp.float32, -limit, limit)


def init_params(key, input_dim, hidden_dim, output_dim):
    ks = jax.random.split(key, 12)
    wa = [glorot(ks[i], (hidden_dim, hidden_dim)) for i in range(3)]       # a-path: z, r, h
    wx = [glorot(ks[3 + i], (hidden_dim, hidden_dim)) for i in range(3)]   # x-path: z, r, h
    graph = {
        "enc_w": glorot(ks[6], (input_dim, hidden_dim)),
        "enc_b": jnp.zeros((1, hidden_dim), jnp.float32),
        "gru_wa": jnp.concatenate(wa, axis=1),                  # (H, 3H)  [z|r|h]
        "gru_ba": jnp.zeros((1, 3 * hidden_dim), jnp.float32),
        "gru_wx_zr": jnp.concatenate(wx[:2], axis=1),           # (H, 2H)  [z|r]
        "gru_bx_zr": jnp.zeros((1, 2 * hidden_dim), jnp.float32),
        "gru_wx_h": wx[2],                                      # (H, H)
        "gru_bx_h": jnp.zeros((1, hidden_dim), jnp.float32),
    }
    readout = {
        "att_w": glorot(ks[7], (hidden_dim, 1)).reshape(1, 1, hidden_dim),
        "att_b": jnp.zeros((1, 1, 1), jnp.float32),
        "emb_w": glorot(ks[8], (hidden_dim, hidden_dim)),
        "emb_b": jnp.zeros((1, hidden_dim), jnp.float32),
        "mlp_w": glorot(ks[9], (hidden_dim, output_dim)),
        "mlp_b": jnp.zeros((1, output_dim), jnp.float32),
    }
    return {"graph": graph, "readout": readout}


# ----------------------------------------------------------------------------
# Pure-JAX reference (numerical sanity check; same math as the PyTorch module)
# ----------------------------------------------------------------------------
def gnn_reference(feature, support, mask, params, gru_step):
    hi = jax.lax.Precision.HIGHEST
    p = params["graph"]
    H = p["enc_w"].shape[1]

    def mm(a, b):
        return jnp.einsum("bnk,kh->bnh", a, b, precision=hi)

    x = mask * jnp.tanh(mm(feature, p["enc_w"]) + p["enc_b"])
    for _ in range(gru_step):
        a = jnp.einsum("bnm,bmh->bnh", support, x, precision=hi)
        ga = mm(a, p["gru_wa"]) + p["gru_ba"]
        gx = mm(x, p["gru_wx_zr"]) + p["gru_bx_zr"]
        z = jax.nn.sigmoid(ga[..., 0:H] + gx[..., 0:H])
        r = jax.nn.sigmoid(ga[..., H:2 * H] + gx[..., H:2 * H])
        h = jnp.tanh(mask * (ga[..., 2 * H:3 * H]
                             + mm(r * x, p["gru_wx_h"]) + p["gru_bx_h"]))
        x = h * z + x * (1.0 - z)
    emb = x

    r_ = params["readout"]
    att = jax.nn.sigmoid(jnp.sum(emb * r_["att_w"], axis=-1, keepdims=True) + r_["att_b"])
    e = jnp.tanh(mm(emb, r_["emb_w"]) + r_["emb_b"])
    n = jnp.sum(mask, axis=1)
    neg = (mask - 1.0) * 1e9
    g = mask * att * e
    g = jnp.sum(g, axis=1) / n + jnp.max(g + neg, axis=1)
    out = jnp.dot(g, r_["mlp_w"], precision=hi) + r_["mlp_b"]
    return out, emb


if __name__ == "__main__":
    B, N = 2, 8                      # batch of graphs, nodes per graph (padded, multiple of 8)
    input_dim, hidden_dim, output_dim = 16, 32, 4
    gru_step = 2
    dropout_p = 0.5                  # identity in inference mode

    key = jax.random.PRNGKey(0)
    kf, ka, kp = jax.random.split(key, 3)

    feature = jax.random.normal(kf, (B, N, input_dim), jnp.float32)

    # normalized symmetric adjacency with self-loops
    adj = (jax.random.uniform(ka, (B, N, N)) > 0.5).astype(jnp.float32)
    adj = jnp.clip(adj + jnp.transpose(adj, (0, 2, 1)) + jnp.eye(N)[None], 0.0, 1.0)

    # node mask (graph 0 has 6 valid nodes, graph 1 has 8)
    valid = jnp.array([6, 8])
    mask = (jnp.arange(N)[None, :] < valid[:, None]).astype(jnp.float32)[..., None]  # (B,N,1)

    adj = adj * mask * jnp.transpose(mask, (0, 2, 1))
    deg = jnp.maximum(jnp.sum(adj, axis=-1, keepdims=True), 1.0)
    support = adj / deg

    root = feature[:, 0, :]                       # unused by the layers (see TODO above)
    rootindex = jnp.zeros((B,), jnp.int32)        # unused by the layers

    params = init_params(kp, input_dim, hidden_dim, output_dim)

    outputs, embeddings = gnn_forward(feature, root, rootindex, support, mask,
                                      params, gru_step)
    outputs = jax.block_until_ready(outputs)
    embeddings = jax.block_until_ready(embeddings)

    out_ref, emb_ref = gnn_reference(feature, support, mask, params, gru_step)

    assert outputs.shape == (B, output_dim)
    assert embeddings.shape == (B, N, hidden_dim)
    assert jnp.allclose(outputs, out_ref, atol=1e-2, rtol=1e-2)
    assert jnp.allclose(embeddings, emb_ref, atol=1e-2, rtol=1e-2)

    print("KERNEL_OK")
</pallas_src>

<mosaic_0001>
module attributes {stable_mosaic.version = 11 : i64} {
  func.func @gnn_kernel(%arg0: i32, %arg1: memref<2x8x16xf32, #tpu.memory_space<vmem>>, %arg2: memref<2x8x8xf32, #tpu.memory_space<vmem>>, %arg3: memref<2x8x1xf32, #tpu.memory_space<vmem>>, %arg4: memref<16x32xf32, #tpu.memory_space<vmem>>, %arg5: memref<1x32xf32, #tpu.memory_space<vmem>>, %arg6: memref<64x96xf32, #tpu.memory_space<vmem>>, %arg7: memref<1x96xf32, #tpu.memory_space<vmem>>, %arg8: memref<32x32xf32, #tpu.memory_space<vmem>>, %arg9: memref<1x1x32xf32, #tpu.memory_space<vmem>>, %arg10: memref<1x1x1xf32, #tpu.memory_space<vmem>>, %arg11: memref<32x32xf32, #tpu.memory_space<vmem>>, %arg12: memref<1x32xf32, #tpu.memory_space<vmem>>, %arg13: memref<32x128xf32, #tpu.memory_space<vmem>>, %arg14: memref<1x128xf32, #tpu.memory_space<vmem>>, %arg15: memref<2x8x32xf32, #tpu.memory_space<vmem>>, %arg16: memref<2x128xf32, #tpu.memory_space<vmem>>, %arg17: memref<16x64xf32, #tpu.memory_space<vmem>>) attributes {dimension_semantics = [#tpu.dimension_semantics<parallel>], iteration_bounds = array<i64: 1>, scalar_prefetch = 0 : i64, scratch_operands = 1 : i64, tpu.core_type = #tpu.core_type<tc>, window_params = [{transform_indices = @transform_0, window_bounds = array<i64: 2, 8, 16>}, {transform_indices = @transform_1, window_bounds = array<i64: 2, 8, 8>}, {transform_indices = @transform_2, window_bounds = array<i64: 2, 8, 1>}, {pipeline_mode = #tpu.pipeline_mode<synchronous>, transform_indices = @transform_3, window_bounds = array<i64: 16, 32>}, {pipeline_mode = #tpu.pipeline_mode<synchronous>, transform_indices = @transform_4, window_bounds = array<i64: 1, 32>}, {pipeline_mode = #tpu.pipeline_mode<synchronous>, transform_indices = @transform_5, window_bounds = array<i64: 64, 96>}, {pipeline_mode = #tpu.pipeline_mode<synchronous>, transform_indices = @transform_6, window_bounds = array<i64: 1, 96>}, {pipeline_mode = #tpu.pipeline_mode<synchronous>, transform_indices = @transform_7, window_bounds = array<i64: 32, 32>}, {pipeline_mode = #tpu.pipeline_mode<synchronous>, transform_indices = @transform_8, window_bounds = array<i64: 1, 1, 32>}, {pipeline_mode = #tpu.pipeline_mode<synchronous>, transform_indices = @transform_9, window_bounds = array<i64: 1, 1, 1>}, {pipeline_mode = #tpu.pipeline_mode<synchronous>, transform_indices = @transform_10, window_bounds = array<i64: 32, 32>}, {pipeline_mode = #tpu.pipeline_mode<synchronous>, transform_indices = @transform_11, window_bounds = array<i64: 1, 32>}, {pipeline_mode = #tpu.pipeline_mode<synchronous>, transform_indices = @transform_12, window_bounds = array<i64: 32, 128>}, {pipeline_mode = #tpu.pipeline_mode<synchronous>, transform_indices = @transform_13, window_bounds = array<i64: 1, 128>}, {transform_indices = @transform_14, window_bounds = array<i64: 2, 8, 32>}, {transform_indices = @transform_15, window_bounds = array<i64: 2, 128>}]} {
    %c0 = arith.constant 0 : index
    %c0_0 = arith.constant 0 : index
    %c0_1 = arith.constant 0 : index
    %0 = vector.load %arg1[%c0, %c0_0, %c0_1] : memref<2x8x16xf32, #tpu.memory_space<vmem>>, vector<2x8x16xf32>
    %1 = vector.shape_cast %0 : vector<2x8x16xf32> to vector<16x16xf32>
    %c0_2 = arith.constant 0 : index
    %c0_3 = arith.constant 0 : index
    %c0_4 = arith.constant 0 : index
    %2 = vector.load %arg2[%c0_2, %c0_3, %c0_4] : memref<2x8x8xf32, #tpu.memory_space<vmem>>, vector<2x8x8xf32>
    %c0_5 = arith.constant 0 : index
    %c0_6 = arith.constant 0 : index
    %c0_7 = arith.constant 0 : index
    %3 = vector.load %arg3[%c0_5, %c0_6, %c0_7] : memref<2x8x1xf32, #tpu.memory_space<vmem>>, vector<2x8x1xf32>
    %4 = vector.shape_cast %3 : vector<2x8x1xf32> to vector<16x1xf32>
    %5 = vector.shape_cast %4 : vector<16x1xf32> to vector<16x1xf32>
    %6 = vector.broadcast %5 : vector<16x1xf32> to vector<16x32xf32>
    %c0_8 = arith.constant 0 : index
    %c0_9 = arith.constant 0 : index
    %7 = vector.load %arg4[%c0_8, %c0_9] : memref<16x32xf32, #tpu.memory_space<vmem>>, vector<16x32xf32>
    %c0_10 = arith.constant 0 : index
    %c0_11 = arith.constant 0 : index
    %8 = vector.load %arg6[%c0_10, %c0_11] : memref<64x96xf32, #tpu.memory_space<vmem>>, vector<64x96xf32>
    %c0_12 = arith.constant 0 : index
    %c0_13 = arith.constant 0 : index
    %9 = vector.load %arg8[%c0_12, %c0_13] : memref<32x32xf32, #tpu.memory_space<vmem>>, vector<32x32xf32>
    %c0_14 = arith.constant 0 : index
    %c0_15 = arith.constant 0 : index
    %10 = vector.load %arg5[%c0_14, %c0_15] : memref<1x32xf32, #tpu.memory_space<vmem>>, vector<1x32xf32>
    %c0_16 = arith.constant 0 : index
    %c0_17 = arith.constant 0 : index
    %11 = vector.load %arg7[%c0_16, %c0_17] : memref<1x96xf32, #tpu.memory_space<vmem>>, vector<1x96xf32>
    %cst = arith.constant dense<0.000000e+00> : vector<16x32xf32>
    %12 = tpu.matmul %1, %7, %cst {dimension_numbers = #tpu.dot_dimension_numbers<[1], [0], [0], [1], [0, 0, 1, 1], [], []>} : vector<16x16xf32>, vector<16x32xf32>, vector<16x32xf32> -> vector<16x32xf32>
    %13 = vector.broadcast %10 : vector<1x32xf32> to vector<16x32xf32>
    %14 = arith.addf %12, %13 : vector<16x32xf32>
    %15 = math.tanh %14 : vector<16x32xf32>
    %16 = arith.mulf %6, %15 : vector<16x32xf32>
    %17 = vector.shape_cast %16 : vector<16x32xf32> to vector<2x8x32xf32>
    %18 = vector.extract_strided_slice %2 {offsets = [0, 0, 0], sizes = [2, 8, 1], strides = [1, 1, 1]} : vector<2x8x8xf32> to vector<2x8x1xf32>
    %19 = vector.extract_strided_slice %17 {offsets = [0, 0, 0], sizes = [2, 1, 32], strides = [1, 1, 1]} : vector<2x8x32xf32> to vector<2x1x32xf32>
    %20 = vector.broadcast %18 : vector<2x8x1xf32> to vector<2x8x32xf32>
    %21 = vector.broadcast %19 : vector<2x1x32xf32> to vector<2x8x32xf32>
    %22 = arith.mulf %20, %21 : vector<2x8x32xf32>
    %23 = vector.extract_strided_slice %2 {offsets = [0, 0, 1], sizes = [2, 8, 1], strides = [1, 1, 1]} : vector<2x8x8xf32> to vector<2x8x1xf32>
    %24 = vector.extract_strided_slice %17 {offsets = [0, 1, 0], sizes = [2, 1, 32], strides = [1, 1, 1]} : vector<2x8x32xf32> to vector<2x1x32xf32>
    %25 = vector.broadcast %23 : vector<2x8x1xf32> to vector<2x8x32xf32>
    %26 = vector.broadcast %24 : vector<2x1x32xf32> to vector<2x8x32xf32>
    %27 = arith.mulf %25, %26 : vector<2x8x32xf32>
    %28 = arith.addf %22, %27 : vector<2x8x32xf32>
    %29 = vector.extract_strided_slice %2 {offsets = [0, 0, 2], sizes = [2, 8, 1], strides = [1, 1, 1]} : vector<2x8x8xf32> to vector<2x8x1xf32>
    %30 = vector.extract_strided_slice %17 {offsets = [0, 2, 0], sizes = [2, 1, 32], strides = [1, 1, 1]} : vector<2x8x32xf32> to vector<2x1x32xf32>
    %31 = vector.broadcast %29 : vector<2x8x1xf32> to vector<2x8x32xf32>
    %32 = vector.broadcast %30 : vector<2x1x32xf32> to vector<2x8x32xf32>
    %33 = arith.mulf %31, %32 : vector<2x8x32xf32>
    %34 = arith.addf %28, %33 : vector<2x8x32xf32>
    %35 = vector.extract_strided_slice %2 {offsets = [0, 0, 3], sizes = [2, 8, 1], strides = [1, 1, 1]} : vector<2x8x8xf32> to vector<2x8x1xf32>
    %36 = vector.extract_strided_slice %17 {offsets = [0, 3, 0], sizes = [2, 1, 32], strides = [1, 1, 1]} : vector<2x8x32xf32> to vector<2x1x32xf32>
    %37 = vector.broadcast %35 : vector<2x8x1xf32> to vector<2x8x32xf32>
    %38 = vector.broadcast %36 : vector<2x1x32xf32> to vector<2x8x32xf32>
    %39 = arith.mulf %37, %38 : vector<2x8x32xf32>
    %40 = arith.addf %34, %39 : vector<2x8x32xf32>
    %41 = vector.extract_strided_slice %2 {offsets = [0, 0, 4], sizes = [2, 8, 1], strides = [1, 1, 1]} : vector<2x8x8xf32> to vector<2x8x1xf32>
    %42 = vector.extract_strided_slice %17 {offsets = [0, 4, 0], sizes = [2, 1, 32], strides = [1, 1, 1]} : vector<2x8x32xf32> to vector<2x1x32xf32>
    %43 = vector.broadcast %41 : vector<2x8x1xf32> to vector<2x8x32xf32>
    %44 = vector.broadcast %42 : vector<2x1x32xf32> to vector<2x8x32xf32>
    %45 = arith.mulf %43, %44 : vector<2x8x32xf32>
    %46 = arith.addf %40, %45 : vector<2x8x32xf32>
    %47 = vector.extract_strided_slice %2 {offsets = [0, 0, 5], sizes = [2, 8, 1], strides = [1, 1, 1]} : vector<2x8x8xf32> to vector<2x8x1xf32>
    %48 = vector.extract_strided_slice %17 {offsets = [0, 5, 0], sizes = [2, 1, 32], strides = [1, 1, 1]} : vector<2x8x32xf32> to vector<2x1x32xf32>
    %49 = vector.broadcast %47 : vector<2x8x1xf32> to vector<2x8x32xf32>
    %50 = vector.broadcast %48 : vector<2x1x32xf32> to vector<2x8x32xf32>
    %51 = arith.mulf %49, %50 : vector<2x8x32xf32>
    %52 = arith.addf %46, %51 : vector<2x8x32xf32>
    %53 = vector.extract_strided_slice %2 {offsets = [0, 0, 6], sizes = [2, 8, 1], strides = [1, 1, 1]} : vector<2x8x8xf32> to vector<2x8x1xf32>
    %54 = vector.extract_strided_slice %17 {offsets = [0, 6, 0], sizes = [2, 1, 32], strides = [1, 1, 1]} : vector<2x8x32xf32> to vector<2x1x32xf32>
    %55 = vector.broadcast %53 : vector<2x8x1xf32> to vector<2x8x32xf32>
    %56 = vector.broadcast %54 : vector<2x1x32xf32> to vector<2x8x32xf32>
    %57 = arith.mulf %55, %56 : vector<2x8x32xf32>
    %58 = arith.addf %52, %57 : vector<2x8x32xf32>
    %59 = vector.extract_strided_slice %2 {offsets = [0, 0, 7], sizes = [2, 8, 1], strides = [1, 1, 1]} : vector<2x8x8xf32> to vector<2x8x1xf32>
    %60 = vector.extract_strided_slice %17 {offsets = [0, 7, 0], sizes = [2, 1, 32], strides = [1, 1, 1]} : vector<2x8x32xf32> to vector<2x1x32xf32>
    %61 = vector.broadcast %59 : vector<2x8x1xf32> to vector<2x8x32xf32>
    %62 = vector.broadcast %60 : vector<2x1x32xf32> to vector<2x8x32xf32>
    %63 = arith.mulf %61, %62 : vector<2x8x32xf32>
    %64 = arith.addf %58, %63 : vector<2x8x32xf32>
    %65 = vector.shape_cast %64 : vector<2x8x32xf32> to vector<16x32xf32>
    %c0_18 = arith.constant 0 : index
    %c0_19 = arith.constant 0 : index
    %66 = vector.load %arg17[%c0_18, %c0_19] : memref<16x64xf32, #tpu.memory_space<vmem>>, vector<16x32xf32>
    tpu.vector_store %arg17[%c0_18, %c0_19], %65 {strides = array<i32>} : memref<16x64xf32, #tpu.memory_space<vmem>>, vector<16x32xf32>,
    %c0_20 = arith.constant 0 : index
    %c32 = arith.constant 32 : index
    %67 = vector.load %arg17[%c0_20, %c32] : memref<16x64xf32, #tpu.memory_space<vmem>>, vector<16x32xf32>
    tpu.vector_store %arg17[%c0_20, %c32], %16 {strides = array<i32>} : memref<16x64xf32, #tpu.memory_space<vmem>>, vector<16x32xf32>,
    %c0_21 = arith.constant 0 : index
    %c0_22 = arith.constant 0 : index
    %68 = vector.load %arg17[%c0_21, %c0_22] : memref<16x64xf32, #tpu.memory_space<vmem>>, vector<16x64xf32>
    %cst_23 = arith.constant dense<0.000000e+00> : vector<16x96xf32>
    %69 = tpu.matmul %68, %8, %cst_23 {dimension_numbers = #tpu.dot_dimension_numbers<[1], [0], [0], [1], [0, 0, 1, 1], [], []>} : vector<16x64xf32>, vector<64x96xf32>, vector<16x96xf32> -> vector<16x96xf32>
    %70 = vector.broadcast %11 : vector<1x96xf32> to vector<16x96xf32>
    %71 = arith.addf %69, %70 : vector<16x96xf32>
    %72 = vector.extract_strided_slice %71 {offsets = [0, 0], sizes = [16, 32], strides = [1, 1]} : vector<16x96xf32> to vector<16x32xf32>
    %73 = arith.negf %72 : vector<16x32xf32>
    %74 = math.exp %73 : vector<16x32xf32>
    %cst_24 = arith.constant 1.000000e+00 : f32
    %75 = vector.broadcast %cst_24 : f32 to vector<16x32xf32>
    %76 = arith.addf %75, %74 : vector<16x32xf32>
    %77 = arith.divf %75, %76 : vector<16x32xf32>
    %78 = vector.extract_strided_slice %71 {offsets = [0, 32], sizes = [16, 32], strides = [1, 1]} : vector<16x96xf32> to vector<16x32xf32>
    %79 = arith.negf %78 : vector<16x32xf32>
    %80 = math.exp %79 : vector<16x32xf32>
    %cst_25 = arith.constant 1.000000e+00 : f32
    %81 = vector.broadcast %cst_25 : f32 to vector<16x32xf32>
    %82 = arith.addf %81, %80 : vector<16x32xf32>
    %83 = arith.divf %81, %82 : vector<16x32xf32>
    %84 = arith.mulf %83, %16 : vector<16x32xf32>
    %85 = vector.extract_strided_slice %71 {offsets = [0, 64], sizes = [16, 32], strides = [1, 1]} : vector<16x96xf32> to vector<16x32xf32>
    %cst_26 = arith.constant dense<0.000000e+00> : vector<16x32xf32>
    %86 = tpu.matmul %84, %9, %cst_26 {dimension_numbers = #tpu.dot_dimension_numbers<[1], [0], [0], [1], [0, 0, 1, 1], [], []>} : vector<16x32xf32>, vector<32x32xf32>, vector<16x32xf32> -> vector<16x32xf32>
    %87 = arith.addf %85, %86 : vector<16x32xf32>
    %88 = arith.mulf %6, %87 : vector<16x32xf32>
    %89 = math.tanh %88 : vector<16x32xf32>
    %90 = arith.mulf %89, %77 : vector<16x32xf32>
    %cst_27 = arith.constant 1.000000e+00 : f32
    %91 = vector.broadcast %cst_27 : f32 to vector<16x32xf32>
    %92 = arith.subf %91, %77 : vector<16x32xf32>
    %93 = arith.mulf %16, %92 : vector<16x32xf32>
    %94 = arith.addf %90, %93 : vector<16x32xf32>
    %95 = vector.shape_cast %94 : vector<16x32xf32> to vector<2x8x32xf32>
    %96 = vector.extract_strided_slice %2 {offsets = [0, 0, 0], sizes = [2, 8, 1], strides = [1, 1, 1]} : vector<2x8x8xf32> to vector<2x8x1xf32>
    %97 = vector.extract_strided_slice %95 {offsets = [0, 0, 0], sizes = [2, 1, 32], strides = [1, 1, 1]} : vector<2x8x32xf32> to vector<2x1x32xf32>
    %98 = vector.broadcast %96 : vector<2x8x1xf32> to vector<2x8x32xf32>
    %99 = vector.broadcast %97 : vector<2x1x32xf32> to vector<2x8x32xf32>
    %100 = arith.mulf %98, %99 : vector<2x8x32xf32>
    %101 = vector.extract_strided_slice %2 {offsets = [0, 0, 1], sizes = [2, 8, 1], strides = [1, 1, 1]} : vector<2x8x8xf32> to vector<2x8x1xf32>
    %102 = vector.extract_strided_slice %95 {offsets = [0, 1, 0], sizes = [2, 1, 32], strides = [1, 1, 1]} : vector<2x8x32xf32> to vector<2x1x32xf32>
    %103 = vector.broadcast %101 : vector<2x8x1xf32> to vector<2x8x32xf32>
    %104 = vector.broadcast %102 : vector<2x1x32xf32> to vector<2x8x32xf32>
    %105 = arith.mulf %103, %104 : vector<2x8x32xf32>
    %106 = arith.addf %100, %105 : vector<2x8x32xf32>
    %107 = vector.extract_strided_slice %2 {offsets = [0, 0, 2], sizes = [2, 8, 1], strides = [1, 1, 1]} : vector<2x8x8xf32> to vector<2x8x1xf32>
    %108 = vector.extract_strided_slice %95 {offsets = [0, 2, 0], sizes = [2, 1, 32], strides = [1, 1, 1]} : vector<2x8x32xf32> to vector<2x1x32xf32>
    %109 = vector.broadcast %107 : vector<2x8x1xf32> to vector<2x8x32xf32>
    %110 = vector.broadcast %108 : vector<2x1x32xf32> to vector<2x8x32xf32>
    %111 = arith.mulf %109, %110 : vector<2x8x32xf32>
    %112 = arith.addf %106, %111 : vector<2x8x32xf32>
    %113 = vector.extract_strided_slice %2 {offsets = [0, 0, 3], sizes = [2, 8, 1], strides = [1, 1, 1]} : vector<2x8x8xf32> to vector<2x8x1xf32>
    %114 = vector.extract_strided_slice %95 {offsets = [0, 3, 0], sizes = [2, 1, 32], strides = [1, 1, 1]} : vector<2x8x32xf32> to vector<2x1x32xf32>
    %115 = vector.broadcast %113 : vector<2x8x1xf32> to vector<2x8x32xf32>
    %116 = vector.broadcast %114 : vector<2x1x32xf32> to vector<2x8x32xf32>
    %117 = arith.mulf %115, %116 : vector<2x8x32xf32>
    %118 = arith.addf %112, %117 : vector<2x8x32xf32>
    %119 = vector.extract_strided_slice %2 {offsets = [0, 0, 4], sizes = [2, 8, 1], strides = [1, 1, 1]} : vector<2x8x8xf32> to vector<2x8x1xf32>
    %120 = vector.extract_strided_slice %95 {offsets = [0, 4, 0], sizes = [2, 1, 32], strides = [1, 1, 1]} : vector<2x8x32xf32> to vector<2x1x32xf32>
    %121 = vector.broadcast %119 : vector<2x8x1xf32> to vector<2x8x32xf32>
    %122 = vector.broadcast %120 : vector<2x1x32xf32> to vector<2x8x32xf32>
    %123 = arith.mulf %121, %122 : vector<2x8x32xf32>
    %124 = arith.addf %118, %123 : vector<2x8x32xf32>
    %125 = vector.extract_strided_slice %2 {offsets = [0, 0, 5], sizes = [2, 8, 1], strides = [1, 1, 1]} : vector<2x8x8xf32> to vector<2x8x1xf32>
    %126 = vector.extract_strided_slice %95 {offsets = [0, 5, 0], sizes = [2, 1, 32], strides = [1, 1, 1]} : vector<2x8x32xf32> to vector<2x1x32xf32>
    %127 = vector.broadcast %125 : vector<2x8x1xf32> to vector<2x8x32xf32>
    %128 = vector.broadcast %126 : vector<2x1x32xf32> to vector<2x8x32xf32>
    %129 = arith.mulf %127, %128 : vector<2x8x32xf32>
    %130 = arith.addf %124, %129 : vector<2x8x32xf32>
    %131 = vector.extract_strided_slice %2 {offsets = [0, 0, 6], sizes = [2, 8, 1], strides = [1, 1, 1]} : vector<2x8x8xf32> to vector<2x8x1xf32>
    %132 = vector.extract_strided_slice %95 {offsets = [0, 6, 0], sizes = [2, 1, 32], strides = [1, 1, 1]} : vector<2x8x32xf32> to vector<2x1x32xf32>
    %133 = vector.broadcast %131 : vector<2x8x1xf32> to vector<2x8x32xf32>
    %134 = vector.broadcast %132 : vector<2x1x32xf32> to vector<2x8x32xf32>
    %135 = arith.mulf %133, %134 : vector<2x8x32xf32>
    %136 = arith.addf %130, %135 : vector<2x8x32xf32>
    %137 = vector.extract_strided_slice %2 {offsets = [0, 0, 7], sizes = [2, 8, 1], strides = [1, 1, 1]} : vector<2x8x8xf32> to vector<2x8x1xf32>
    %138 = vector.extract_strided_slice %95 {offsets = [0, 7, 0], sizes = [2, 1, 32], strides = [1, 1, 1]} : vector<2x8x32xf32> to vector<2x1x32xf32>
    %139 = vector.broadcast %137 : vector<2x8x1xf32> to vector<2x8x32xf32>
    %140 = vector.broadcast %138 : vector<2x1x32xf32> to vector<2x8x32xf32>
    %141 = arith.mulf %139, %140 : vector<2x8x32xf32>
    %142 = arith.addf %136, %141 : vector<2x8x32xf32>
    %143 = vector.shape_cast %142 : vector<2x8x32xf32> to vector<16x32xf32>
    %c0_28 = arith.constant 0 : index
    %c0_29 = arith.constant 0 : index
    %144 = vector.load %arg17[%c0_28, %c0_29] : memref<16x64xf32, #tpu.memory_space<vmem>>, vector<16x32xf32>
    tpu.vector_store %arg17[%c0_28, %c0_29], %143 {strides = array<i32>} : memref<16x64xf32, #tpu.memory_space<vmem>>, vector<16x32xf32>,
    %c0_30 = arith.constant 0 : index
    %c32_31 = arith.constant 32 : index
    %145 = vector.load %arg17[%c0_30, %c32_31] : memref<16x64xf32, #tpu.memory_space<vmem>>, vector<16x32xf32>
    tpu.vector_store %arg17[%c0_30, %c32_31], %94 {strides = array<i32>} : memref<16x64xf32, #tpu.memory_space<vmem>>, vector<16x32xf32>,
    %c0_32 = arith.constant 0 : index
    %c0_33 = arith.constant 0 : index
    %146 = vector.load %arg17[%c0_32, %c0_33] : memref<16x64xf32, #tpu.memory_space<vmem>>, vector<16x64xf32>
    %cst_34 = arith.constant dense<0.000000e+00> : vector<16x96xf32>
    %147 = tpu.matmul %146, %8, %cst_34 {dimension_numbers = #tpu.dot_dimension_numbers<[1], [0], [0], [1], [0, 0, 1, 1], [], []>} : vector<16x64xf32>, vector<64x96xf32>, vector<16x96xf32> -> vector<16x96xf32>
    %148 = vector.broadcast %11 : vector<1x96xf32> to vector<16x96xf32>
    %149 = arith.addf %147, %148 : vector<16x96xf32>
    %150 = vector.extract_strided_slice %149 {offsets = [0, 0], sizes = [16, 32], strides = [1, 1]} : vector<16x96xf32> to vector<16x32xf32>
    %151 = arith.negf %150 : vector<16x32xf32>
    %152 = math.exp %151 : vector<16x32xf32>
    %cst_35 = arith.constant 1.000000e+00 : f32
    %153 = vector.broadcast %cst_35 : f32 to vector<16x32xf32>
    %154 = arith.addf %153, %152 : vector<16x32xf32>
    %155 = arith.divf %153, %154 : vector<16x32xf32>
    %156 = vector.extract_strided_slice %149 {offsets = [0, 32], sizes = [16, 32], strides = [1, 1]} : vector<16x96xf32> to vector<16x32xf32>
    %157 = arith.negf %156 : vector<16x32xf32>
    %158 = math.exp %157 : vector<16x32xf32>
    %cst_36 = arith.constant 1.000000e+00 : f32
    %159 = vector.broadcast %cst_36 : f32 to vector<16x32xf32>
    %160 = arith.addf %159, %158 : vector<16x32xf32>
    %161 = arith.divf %159, %160 : vector<16x32xf32>
    %162 = arith.mulf %161, %94 : vector<16x32xf32>
    %163 = vector.extract_strided_slice %149 {offsets = [0, 64], sizes = [16, 32], strides = [1, 1]} : vector<16x96xf32> to vector<16x32xf32>
    %cst_37 = arith.constant dense<0.000000e+00> : vector<16x32xf32>
    %164 = tpu.matmul %162, %9, %cst_37 {dimension_numbers = #tpu.dot_dimension_numbers<[1], [0], [0], [1], [0, 0, 1, 1], [], []>} : vector<16x32xf32>, vector<32x32xf32>, vector<16x32xf32> -> vector<16x32xf32>
    %165 = arith.addf %163, %164 : vector<16x32xf32>
    %166 = arith.mulf %6, %165 : vector<16x32xf32>
    %167 = math.tanh %166 : vector<16x32xf32>
    %168 = arith.mulf %167, %155 : vector<16x32xf32>
    %cst_38 = arith.constant 1.000000e+00 : f32
    %169 = vector.broadcast %cst_38 : f32 to vector<16x32xf32>
    %170 = arith.subf %169, %155 : vector<16x32xf32>
    %171 = arith.mulf %94, %170 : vector<16x32xf32>
    %172 = arith.addf %168, %171 : vector<16x32xf32>
    %173 = vector.shape_cast %172 : vector<16x32xf32> to vector<2x8x32xf32>
    %c0_39 = arith.constant 0 : index
    %c0_40 = arith.constant 0 : index
    %c0_41 = arith.constant 0 : index
    %174 = vector.load %arg15[%c0_39, %c0_40, %c0_41] : memref<2x8x32xf32, #tpu.memory_space<vmem>>, vector<2x8x32xf32>
    tpu.vector_store %arg15[%c0_39, %c0_40, %c0_41], %173 {strides = array<i32>} : memref<2x8x32xf32, #tpu.memory_space<vmem>>, vector<2x8x32xf32>,
    %c0_42 = arith.constant 0 : index
    %c0_43 = arith.constant 0 : index
    %c0_44 = arith.constant 0 : index
    %175 = vector.load %arg9[%c0_42, %c0_43, %c0_44] : memref<1x1x32xf32, #tpu.memory_space<vmem>>, vector<1x1x32xf32>
    %176 = vector.broadcast %175 : vector<1x1x32xf32> to vector<2x8x32xf32>
    %177 = arith.mulf %173, %176 : vector<2x8x32xf32>
    %cst_45 = arith.constant dense<0.000000e+00> : vector<2x8xf32>
    %178 = vector.multi_reduction <add>, %177, %cst_45 [2] : vector<2x8x32xf32> to vector<2x8xf32>
    %179 = vector.shape_cast %178 : vector<2x8xf32> to vector<2x8x1xf32>
    %c0_46 = arith.constant 0 : index
    %c0_47 = arith.constant 0 : index
    %c0_48 = arith.constant 0 : index
    %180 = vector.load %arg10[%c0_46, %c0_47, %c0_48] : memref<1x1x1xf32, #tpu.memory_space<vmem>>, vector<1x1x1xf32>
    %181 = vector.broadcast %180 : vector<1x1x1xf32> to vector<2x8x1xf32>
    %182 = arith.addf %179, %181 : vector<2x8x1xf32>
    %183 = arith.negf %182 : vector<2x8x1xf32>
    %184 = math.exp %183 : vector<2x8x1xf32>
    %cst_49 = arith.constant 1.000000e+00 : f32
    %185 = vector.broadcast %cst_49 : f32 to vector<2x8x1xf32>
    %186 = arith.addf %185, %184 : vector<2x8x1xf32>
    %187 = arith.divf %185, %186 : vector<2x8x1xf32>
    %c0_50 = arith.constant 0 : index
    %c0_51 = arith.constant 0 : index
    %188 = vector.load %arg11[%c0_50, %c0_51] : memref<32x32xf32, #tpu.memory_space<vmem>>, vector<32x32xf32>
    %cst_52 = arith.constant dense<0.000000e+00> : vector<16x32xf32>
    %189 = tpu.matmul %172, %188, %cst_52 {dimension_numbers = #tpu.dot_dimension_numbers<[1], [0], [0], [1], [0, 0, 1, 1], [], []>} : vector<16x32xf32>, vector<32x32xf32>, vector<16x32xf32> -> vector<16x32xf32>
    %c0_53 = arith.constant 0 : index
    %c0_54 = arith.constant 0 : index
    %190 = vector.load %arg12[%c0_53, %c0_54] : memref<1x32xf32, #tpu.memory_space<vmem>>, vector<1x32xf32>
    %191 = vector.broadcast %190 : vector<1x32xf32> to vector<16x32xf32>
    %192 = arith.addf %189, %191 : vector<16x32xf32>
    %193 = math.tanh %192 : vector<16x32xf32>
    %194 = vector.shape_cast %193 : vector<16x32xf32> to vector<2x8x32xf32>
    %cst_55 = arith.constant dense<0.000000e+00> : vector<2x1xf32>
    %195 = vector.multi_reduction <add>, %3, %cst_55 [1] : vector<2x8x1xf32> to vector<2x1xf32>
    %cst_56 = arith.constant 1.000000e+00 : f32
    %196 = vector.broadcast %cst_56 : f32 to vector<2x1xf32>
    %197 = arith.maximumf %195, %196 : vector<2x1xf32>
    %198 = tpu.reciprocal %197 {approx = true} : vector<2x1xf32> -> vector<2x1xf32>
    %cst_57 = arith.constant 1.000000e+00 : f32
    %199 = vector.broadcast %cst_57 : f32 to vector<2x8x1xf32>
    %200 = arith.subf %3, %199 : vector<2x8x1xf32>
    %cst_58 = arith.constant 1.000000e+09 : f32
    %201 = vector.broadcast %cst_58 : f32 to vector<2x8x1xf32>
    %202 = arith.mulf %200, %201 : vector<2x8x1xf32>
    %203 = arith.mulf %3, %187 : vector<2x8x1xf32>
    %204 = vector.broadcast %203 : vector<2x8x1xf32> to vector<2x8x32xf32>
    %205 = arith.mulf %204, %194 : vector<2x8x32xf32>
    %cst_59 = arith.constant dense<0.000000e+00> : vector<2x32xf32>
    %206 = vector.multi_reduction <add>, %205, %cst_59 [1] : vector<2x8x32xf32> to vector<2x32xf32>
    %207 = vector.broadcast %198 : vector<2x1xf32> to vector<2x32xf32>
    %208 = arith.mulf %206, %207 : vector<2x32xf32>
    %209 = vector.broadcast %202 : vector<2x8x1xf32> to vector<2x8x32xf32>
    %210 = arith.addf %205, %209 : vector<2x8x32xf32>
    %cst_60 = arith.constant dense<0xFF800000> : vector<2x32xf32>
    %211 = vector.multi_reduction <maximumf>, %210, %cst_60 [1] : vector<2x8x32xf32> to vector<2x32xf32>
    %212 = arith.addf %208, %211 : vector<2x32xf32>
    %c0_61 = arith.constant 0 : index
    %c0_62 = arith.constant 0 : index
    %213 = vector.load %arg13[%c0_61, %c0_62] : memref<32x128xf32, #tpu.memory_space<vmem>>, vector<32x128xf32>
    %cst_63 = arith.constant dense<0.000000e+00> : vector<2x128xf32>
    %214 = tpu.matmul %212, %213, %cst_63 {dimension_numbers = #tpu.dot_dimension_numbers<[1], [0], [0], [1], [0, 0, 1, 1], [], []>} : vector<2x32xf32>, vector<32x128xf32>, vector<2x128xf32> -> vector<2x128xf32>
    %c0_64 = arith.constant 0 : index
    %c0_65 = arith.constant 0 : index
    %215 = vector.load %arg14[%c0_64, %c0_65] : memref<1x128xf32, #tpu.memory_space<vmem>>, vector<1x128xf32>
    %216 = vector.broadcast %215 : vector<1x128xf32> to vector<2x128xf32>
    %217 = arith.addf %214, %216 : vector<2x128xf32>
    %c0_66 = arith.constant 0 : index
    %c0_67 = arith.constant 0 : index
    %218 = vector.load %arg16[%c0_66, %c0_67] : memref<2x128xf32, #tpu.memory_space<vmem>>, vector<2x128xf32>
    tpu.vector_store %arg16[%c0_66, %c0_67], %217 {strides = array<i32>} : memref<2x128xf32, #tpu.memory_space<vmem>>, vector<2x128xf32>,
    return
  }
  func.func @transform_0(%arg0: i32) -> (i32, i32, i32) {
    %c0_i32 = arith.constant 0 : i32
    %c0_i32_0 = arith.constant 0 : i32
    %c0_i32_1 = arith.constant 0 : i32
    return %arg0, %c0_i32, %c0_i32_0 : i32, i32, i32
  }
  func.func @transform_1(%arg0: i32) -> (i32, i32, i32) {
    %c0_i32 = arith.constant 0 : i32
    %c0_i32_0 = arith.constant 0 : i32
    %c0_i32_1 = arith.constant 0 : i32
    return %arg0, %c0_i32, %c0_i32_0 : i32, i32, i32
  }
  func.func @transform_2(%arg0: i32) -> (i32, i32, i32) {
    %c0_i32 = arith.constant 0 : i32
    %c0_i32_0 = arith.constant 0 : i32
    %c0_i32_1 = arith.constant 0 : i32
    return %arg0, %c0_i32, %c0_i32_0 : i32, i32, i32
  }
  func.func @transform_3(%arg0: i32) -> (i32, i32) {
    %c0_i32 = arith.constant 0 : i32
    %c0_i32_0 = arith.constant 0 : i32
    %c0_i32_1 = arith.constant 0 : i32
    return %c0_i32, %c0_i32_0 : i32, i32
  }
  func.func @transform_4(%arg0: i32) -> (i32, i32) {
    %c0_i32 = arith.constant 0 : i32
    %c0_i32_0 = arith.constant 0 : i32
    %c0_i32_1 = arith.constant 0 : i32
    return %c0_i32, %c0_i32_0 : i32, i32
  }
  func.func @transform_5(%arg0: i32) -> (i32, i32) {
    %c0_i32 = arith.constant 0 : i32
    %c0_i32_0 = arith.constant 0 : i32
    %c0_i32_1 = arith.constant 0 : i32
    return %c0_i32, %c0_i32_0 : i32, i32
  }
  func.func @transform_6(%arg0: i32) -> (i32, i32) {
    %c0_i32 = arith.constant 0 : i32
    %c0_i32_0 = arith.constant 0 : i32
    %c0_i32_1 = arith.constant 0 : i32
    return %c0_i32, %c0_i32_0 : i32, i32
  }
  func.func @transform_7(%arg0: i32) -> (i32, i32) {
    %c0_i32 = arith.constant 0 : i32
    %c0_i32_0 = arith.constant 0 : i32
    %c0_i32_1 = arith.constant 0 : i32
    return %c0_i32, %c0_i32_0 : i32, i32
  }
  func.func @transform_8(%arg0: i32) -> (i32, i32, i32) {
    %c0_i32 = arith.constant 0 : i32
    %c0_i32_0 = arith.constant 0 : i32
    %c0_i32_1 = arith.constant 0 : i32
    %c0_i32_2 = arith.constant 0 : i32
    return %c0_i32, %c0_i32_0, %c0_i32_1 : i32, i32, i32
  }
  func.func @transform_9(%arg0: i32) -> (i32, i32, i32) {
    %c0_i32 = arith.constant 0 : i32
    %c0_i32_0 = arith.constant 0 : i32
    %c0_i32_1 = arith.constant 0 : i32
    %c0_i32_2 = arith.constant 0 : i32
    return %c0_i32, %c0_i32_0, %c0_i32_1 : i32, i32, i32
  }
  func.func @transform_10(%arg0: i32) -> (i32, i32) {
    %c0_i32 = arith.constant 0 : i32
    %c0_i32_0 = arith.constant 0 : i32
    %c0_i32_1 = arith.constant 0 : i32
    return %c0_i32, %c0_i32_0 : i32, i32
  }
  func.func @transform_11(%arg0: i32) -> (i32, i32) {
    %c0_i32 = arith.constant 0 : i32
    %c0_i32_0 = arith.constant 0 : i32
    %c0_i32_1 = arith.constant 0 : i32
    return %c0_i32, %c0_i32_0 : i32, i32
  }
  func.func @transform_12(%arg0: i32) -> (i32, i32) {
    %c0_i32 = arith.constant 0 : i32
    %c0_i32_0 = arith.constant 0 : i32
    %c0_i32_1 = arith.constant 0 : i32
    return %c0_i32, %c0_i32_0 : i32, i32
  }
  func.func @transform_13(%arg0: i32) -> (i32, i32) {
    %c0_i32 = arith.constant 0 : i32
    %c0_i32_0 = arith.constant 0 : i32
    %c0_i32_1 = arith.constant 0 : i32
    return %c0_i32, %c0_i32_0 : i32, i32
  }
  func.func @transform_14(%arg0: i32) -> (i32, i32, i32) {
    %c0_i32 = arith.constant 0 : i32
    %c0_i32_0 = arith.constant 0 : i32
    %c0_i32_1 = arith.constant 0 : i32
    return %arg0, %c0_i32, %c0_i32_0 : i32, i32, i32
  }
  func.func @transform_15(%arg0: i32) -> (i32, i32) {
    %c0_i32 = arith.constant 0 : i32
    %c0_i32_0 = arith.constant 0 : i32
    return %arg0, %c0_i32 : i32, i32
  }
}

</mosaic_0001>

<bundles_post_ra>
// kernel: tpu_custom_call.1
= control target key start
LH: loop header
LB: loop body
LE: loop exit
PB: predicated region body
PF: predicated region fallthrough
CT: control target
= control target key end

     0   :  { %s1671_s0 = inlined_call_operand.vmem [shape: f32[2,8,16], index: 0, kind: input, shape index: {}]   ;;  %s1672_s1 = inlined_call_operand.hbm [shape: f32[2,8,8], index: 1, kind: input, shape index: {}]   ;;  %s1673_s2 = inlined_call_operand.vmem [shape: f32[2,8,1], index: 2, kind: input, shape index: {}]   ;;  %s1674_s3 = inlined_call_operand.hbm [shape: f32[16,32], index: 3, kind: input, shape index: {}]   ;;  %s1675_s4 = inlined_call_operand.vmem [shape: f32[1,32], index: 4, kind: input, shape index: {}]   ;;  %s1676_s5 = inlined_call_operand.hbm [shape: f32[64,96], index: 5, kind: input, shape index: {}]   ;;  %s1677_s6 = inlined_call_operand.vmem [shape: f32[1,96], index: 6, kind: input, shape index: {}]   ;;  %s1678_s7 = inlined_call_operand.hbm [shape: f32[32,32], index: 7, kind: input, shape index: {}]   ;;  %s1679_s8 = inlined_call_operand.vmem [shape: f32[1,1,32], index: 8, kind: input, shape index: {}]   ;;  %s1680_s9 = inlined_call_operand.<no memory space> [shape: f32[1,1,1], index: 9, kind: input, shape index: {}]   ;;  %s1681_s10 = inlined_call_operand.hbm [shape: f32[32,32], index: 10, kind: input, shape index: {}]   ;;  %s1682_s11 = inlined_call_operand.vmem [shape: f32[1,32], index: 11, kind: input, shape index: {}]   ;;  %s1683_s12 = inlined_call_operand.hbm [shape: f32[32,128], index: 12, kind: input, shape index: {}]   ;;  %s1684_s13 = inlined_call_operand.vmem [shape: f32[1,128], index: 13, kind: input, shape index: {}]   ;;  %s1685_s14 = inlined_call_operand.hbm [shape: f32[2,8,32], index: 14, kind: output, shape index: {0}]   ;;  %s1686_s15 = inlined_call_operand.hbm [shape: f32[2,128], index: 15, kind: output, shape index: {1}]  }
   0x1   :  { %v21_v0 = vstv %s1680_s9 }
   0x2   :  { %22 = vst [vmem:[#allocation3] sm:$0x1] %v21_v0 }
   0x3   :  { %23 = vsyncpa [#allocation5], 0 }
   0x4   :  { %24 = vsyncpa [#allocation8], 0 }
   0x5   :  { %25 = vsyncpa [#allocation11], 0 }
   0x6   :  { %26 = vsyncpa [#allocation14], 0 }
   0x7   :  { %27 = vsyncpa [#allocation6], 0 }
   0x8   :  { %28 = vsyncpa [#allocation17], 0  ;;  %s50_s22 = sshll.u32 %s1674_s3, 4  ;;  %s1289_s23 = smov [#allocation7]   ;;  %s51_s22 = int_to_ptr.hbm [resolvable:$true] %s50_s22 }
   0x9   :  { %s52_s24 = sshll.u32 %s1289_s23, 4  ;;  %s80_s27 = sshll.u32 %s1678_s7, 4  ;;  %s53_s24 = int_to_ptr.vmem [resolvable:$true] %s52_s24  ;;  %s81_s27 = int_to_ptr.hbm [resolvable:$true] %s80_s27 }
   0xa   :  { %s1290_s9 = smov 128   ;;  %s1291_s28 = smov 8  }
   0xb   :  { %58 = dma.hbm_to_vmem [thread:$0]  %s51_s22, 256, %s53_s24, [#allocation8], %s1290_s9, %s1290_s9, %s1291_s28  }
   0xc   :  { %s1292_s29 = smov [#allocation10]   ;;  %s35_s3 = sshll.u32 %s1672_s1, 4  ;;  %s36_s3 = int_to_ptr.hbm [resolvable:$true] %s35_s3 }
   0xd   :  { %s82_s30 = sshll.u32 %s1292_s29, 4  ;;  %s65_s19 = sshll.u32 %s1676_s5, 4  ;;  %s83_s30 = int_to_ptr.vmem [resolvable:$true] %s82_s30  ;;  %s66_s19 = int_to_ptr.hbm [resolvable:$true] %s65_s19 }
   0xe   :  { %88 = dma.hbm_to_vmem [thread:$0]  %s81_s27, 512, %s83_s30, [#allocation11], %s1290_s9, %s1290_s9, %s1291_s28  }
   0xf   :  { %s1293_s20 = smov [#allocation4]   ;;  %s1294_s22 = smov [#allocation9]  }
  0x10   :  { %s37_s21 = sshll.u32 %s1293_s20, 4  ;;  %s67_s1 = sshll.u32 %s1294_s22, 4  ;;  %s38_s21 = int_to_ptr.vmem [resolvable:$true] %s37_s21  ;;  %s68_s1 = int_to_ptr.vmem [resolvable:$true] %s67_s1 }
  0x11   :  { %43 = dma.hbm_to_vmem [thread:$0]  %s36_s3, 256, %s38_s21, [#allocation5], %s1290_s9, %s1290_s9, %s1291_s28  }
  0x12   :  { %s97_s25 = sshll.u32 %s1681_s10, 4  ;;  %s112_s27 = sshll.u32 %s1683_s12, 4  ;;  %s98_s25 = int_to_ptr.hbm [resolvable:$true] %s97_s25  ;;  %s113_s27 = int_to_ptr.hbm [resolvable:$true] %s112_s27 }
  0x13   :  { %73 = dma.hbm_to_vmem [thread:$0]  %s66_s19, 1024, %s68_s1, [#allocation8], %s1290_s9, %s1290_s9, %s1291_s28  }
  0x14   :  { %s1295_s29 = smov [#allocation12]   ;;  %s1296_s16 = smov [#allocation13]  }
  0x15   :  { %s99_s30 = sshll.u32 %s1295_s29, 4  ;;  %s114_s10 = sshll.u32 %s1296_s16, 4  ;;  %s100_s30 = int_to_ptr.vmem [resolvable:$true] %s99_s30  ;;  %s115_s10 = int_to_ptr.vmem [resolvable:$true] %s114_s10 }
  0x16   :  { %105 = dma.hbm_to_vmem [thread:$0]  %s98_s25, 512, %s100_s30, [#allocation11], %s1290_s9, %s1290_s9, %s1291_s28  }
  0x17   :  { %120 = dma.hbm_to_vmem [thread:$0]  %s113_s27, 512, %s115_s10, [#allocation14], %s1290_s9, %s1290_s9, %s1291_s28  }
  0x18   :  { %1277 = dma.done.wait [#allocation5], 256  }
  0x19   :  { %1278 = vsyncadd [#allocation5], 4294967040 }
  0x1a   :  { %1279 = dma.done.wait [#allocation8], 1280  }
  0x1b   :  { %1280 = vsyncadd [#allocation8], 4294966016 }
  0x1c   :  { %1281 = dma.done.wait [#allocation11], 1024  }
  0x1d   :  { %1282 = vsyncadd [#allocation11], 4294966272 }
  0x1e   :  { %1283 = dma.done.wait [#allocation14], 512  }
  0x1f   :  { %1284 = vsyncadd [#allocation14], 4294966784  ;;  %v1297_v1 = vmov 0   ;;  %v1298_v2 = vmov 2   ;;  %v164_v3 = vld [vmem:[#allocation7 + $0x8] sm:$0xff]  ;;  %v149_v4 = vld [vmem:[#allocation4] sm:$0xff] }
  0x20   :  { %1016 = vset.pattern.permute.xlu1 %v1297_v1  ;;  %1015 = vset.pattern.permute.xlu0 %v1297_v1  ;;  %v1432_v5 = vld [vmem:[%s1673_s2] sm:$0xff]  ;;  %vm182_vm0 = vcmask 130048   ;;  %v1441_v8 = vld [vmem:[%s1673_s2 + $0x8] sm:$0xff]  ;;  %v1299_v9 = vmov 1   ;;  %v1300_v11 = vmov 3   ;;  %v1301_v13 = vmov 4  }
  0x21   :  { %1018 = vset.pattern.permute.xlu2 %v1298_v2  ;;  %203 = vmatpush.msra.mxu0 %v164_v3  ;;  %v163_v6 = vld [vmem:[#allocation7] sm:$0xff]  ;;  %v150_v12 = vld [vmem:[#allocation4 + $0x8] sm:$0xff]  ;;  %v1302_v14 = vmov 6   ;;  %v1303_v15 = vmov 5   ;;  %v1304_v16 = vmov 7   ;;  %v172_v38 = vld [vmem:[#allocation9 + $0x38] sm:$0xff] }
  0x22   :  { %218 = vperm.xlu1 %1016, %v149_v4   ;;  %v147_v7 = vld [vmem:[%s1671_s0] sm:$0xff]  ;;  %155 = vperm.xlu0 %1015, %v1432_v5   ;;  %v148_v10 = vld [vmem:[%s1671_s0 + $0x8] sm:$0xff]  ;;  %v169_v48 = vld [vmem:[#allocation9 + $0x20] sm:$0xff]  ;;  %vm328_vm1 = vcmask 261120   ;;  %vm339_vm2 = vcmask 523520   ;;  %vm347_vm3 = vcmask 523264  }
  0x23   :  { %245 = vperm.xlu2 %1018, %v149_v4   ;;  %204 = vmatpush.msra.mxu0 %v163_v6  ;;  %v1035_v22 = vld [vmem:[%s1675_s4] ss:$0 sm:$0xff]  ;;  %s1305_s4 = smov 32   ;;  %v171_v39 = vld [vmem:[#allocation9 + $0x30] sm:$0xff]  ;;  %s1307_s23 = smov 64  }
  0x24   :  { %973 = vmatmul.msk.f32.vlgmr.msra.gmra.mxu0 %vm182_vm0, %v147_v7  ;;  %362 = vmatpush.msra.mxu1 %v172_v38  ;;  %v170_v43 = vld [vmem:[#allocation9 + $0x28] sm:$0xff]  ;;  %s941_s27 = sshll.u32 %s1685_s14, 4  ;;  %s1308_s29 = smov [#allocation15]   ;;  %s942_s27 = int_to_ptr.hbm [resolvable:$true] %s941_s27 }
  0x25   :  { %570 = vmatpush.msra.mxu3 %v172_v38  ;;  %s939_s30 = sshll.u32 %s1308_s29, 4  ;;  %s1309_s12 = smov [#allocation16]   ;;  %s940_s30 = int_to_ptr.vmem [resolvable:$true] %s939_s30 }
  0x26   :  { %363 = vmatpush.msra.mxu1 %v171_v39  ;;  %s953_s17 = sshll.u32 %s1309_s12, 4  ;;  %s955_s18 = sshll.u32 %s1686_s15, 4  ;;  %s954_s17 = int_to_ptr.vmem [resolvable:$true] %s953_s17  ;;  %s956_s18 = int_to_ptr.hbm [resolvable:$true] %s955_s18 }
  0x27   :  { %571 = vmatpush.msra.mxu3 %v171_v39 }
  0x28   :  { %364 = vmatpush.msra.mxu1 %v170_v43 }
  0x29   :  { %572 = vmatpush.msra.mxu3 %v170_v43 }
  0x2a   :  { %1017 = vset.pattern.permute.xlu1 %v1299_v9  ;;  %160 = vperm.xlu0 %1015, %v1441_v8  }
  0x2b   :  { %231 = vperm.xlu1 %1017, %v149_v4   ;;  %1019 = vset.pattern.permute.xlu2 %v1300_v11 }
  0x2c   :  { %974 = vmatmul.msk.f32.gmra.mxu0 %vm182_vm0, %v148_v10  ;;  %259 = vperm.xlu2 %1019, %v149_v4  }
  0x2d   :  { %365 = vmatpush.msra.mxu1 %v169_v48  ;;  %573 = vmatpush.msra.mxu3 %v169_v48 }
  0x32   :  { %1020 = vset.pattern.permute.xlu0 %v1301_v13 }
  0x33   :  { %1021 = vset.pattern.permute.xlu1 %v1297_v1  ;;  %273 = vperm.xlu0 %1020, %v149_v4  }
  0x34   :  { %223 = vperm.xlu1 %1021, %v150_v12   ;;  %1022 = vset.pattern.permute.xlu2 %v1299_v9 }
  0x35   :  { %235 = vperm.xlu2 %1022, %v150_v12  }
  0x3b   :  { %1025 = vset.pattern.permute.xlu0 %v1302_v14 }
  0x3c   :  { %1023 = vset.pattern.permute.xlu1 %v1303_v15  ;;  %301 = vperm.xlu0 %1025, %v149_v4  }
  0x3d   :  { %287 = vperm.xlu1 %1023, %v149_v4   ;;  %1024 = vset.pattern.permute.xlu2 %v1298_v2 }
  0x3e   :  { %249 = vperm.xlu2 %1024, %v150_v12  }
  0x44   :  { %1034 = vset.pattern.permute.xlu0 %v1297_v1 }
  0x45   :  { %1026 = vset.pattern.permute.xlu1 %v1300_v11 }
  0x46   :  { %263 = vperm.xlu1 %1026, %v150_v12   ;;  %1027 = vset.pattern.permute.xlu2 %v1304_v16 }
  0x47   :  { %315 = vperm.xlu2 %1027, %v149_v4  }
  0x4e   :  { %1028 = vset.pattern.permute.xlu1 %v1301_v13 }
  0x4f   :  { %277 = vperm.xlu1 %1028, %v150_v12   ;;  %1029 = vset.pattern.permute.xlu2 %v1303_v15 }
  0x50   :  { %291 = vperm.xlu2 %1029, %v150_v12  }
  0x57   :  { %1030 = vset.pattern.permute.xlu1 %v1302_v14 }
  0x58   :  { %305 = vperm.xlu1 %1030, %v150_v12   ;;  %1031 = vset.pattern.permute.xlu2 %v1304_v16 }
  0x59   :  { %319 = vperm.xlu2 %1031, %v150_v12  }
  0x60   :  { %1032 = vset.pattern.permute.xlu1 %v1297_v1 }
  0x61   :  { %1033 = vset.pattern.permute.xlu2 %v1297_v1 }
  0x7d   :  { %v1447_v17 = vpop.permute.xlu2 %245 }
  0x86   :  { %v1451_v19 = vpop.permute.xlu2 %259 }
  0x8f   :  { %v1460_v23 = vpop.permute.xlu2 %235 }
  0x94   :  { %v1449_v18 = vpop.permute.xlu1 %218  ;;  %v1453_v20 = vpop.permute.xlu0 %155 }
  0x98   :  { %v1466_v31 = vpop.permute.xlu2 %249 }
  0x9c   :  { %v1462_v25 = vpop.permute.xlu0 %160 }
  0x9d   :  { %v1455_v21 = vpop.permute.xlu1 %231 }
  0xa1   :  { %v206_v24 = vpop.f32.mrf.mxu0  ;;  %v1490_v55 = vpop.permute.xlu2 %315 }
  0xa2   :  { %v207_v26 = vadd.f32 %v1035_v22, %v206_v24 }
  0xa4   :  { %1041 = vtanh.f32 %v207_v26 }
  0xa5   :  { %v1471_v33 = vpop.permute.xlu0 %273 }
  0xa6   :  { %v1464_v27 = vpop.permute.xlu1 %223 }
  0xa9   :  { %v209_v28 = vpop.f32.mrf.mxu0 }
  0xaa   :  { %v1042_v29 = vpop.eup %1041  ;;  %v210_v30 = vadd.f32 %v1035_v22, %v209_v28  ;;  %v1509_v13 = vpop.permute.xlu2 %291 }
  0xab   :  { %v1469_v32 = vmul.f32 %v1042_v29, %v1453_v20 }
  0xac   :  { %1043 = vtanh.f32 %v210_v30 }
  0xad   :  { %v226_v34 = vperm.slane %v1469_v32, 0  ;;  %v238_v35 = vperm.slane %v1469_v32, 1  ;;  %v252_v36 = vperm.slane %v1469_v32, 2  ;;  %333 = vrot.lane.b32.xlu0 %v1469_v32, %s1305_s4  ;;  %v266_v42 = vperm.slane %v1469_v32, 3 }
  0xae   :  { %v280_v46 = vperm.slane %v1469_v32, 4  ;;  %v294_v52 = vperm.slane %v1469_v32, 5  ;;  %v308_v56 = vperm.slane %v1469_v32, 6  ;;  %v1495_v58 = vpop.permute.xlu0 %301  ;;  %v322_v61 = vperm.slane %v1469_v32, 7 }
  0xaf   :  { %v1477_v37 = vpop.permute.xlu1 %287  ;;  %v228_v40 = vmul.f32 %v226_v34, %v1449_v18  ;;  %v240_v41 = vmul.f32 %v238_v35, %v1455_v21  ;;  %v254_v45 = vmul.f32 %v252_v36, %v1447_v17  ;;  %v268_v50 = vmul.f32 %v266_v42, %v1451_v19 }
  0xb0   :  { %v282_v54 = vmul.f32 %v280_v46, %v1471_v33  ;;  %v296_v62 = vmul.f32 %v294_v52, %v1477_v37  ;;  %v310_v2 = vmul.f32 %v308_v56, %v1495_v58  ;;  %v324_v6 = vmul.f32 %v322_v61, %v1490_v55  ;;  %v166_v46 = vld [vmem:[#allocation9 + $0x8] sm:$0xff] }
  0xb1   :  { %v242_v44 = vadd.f32 %v240_v41, %v228_v40 }
  0xb2   :  { %v1044_v47 = vpop.eup %1043 }
  0xb3   :  { %v256_v49 = vadd.f32 %v254_v45, %v242_v44  ;;  %v1486_v51 = vmul.f32 %v1044_v47, %v1462_v25  ;;  %v1521_v36 = vpop.permute.xlu2 %319  ;;  %v168_v44 = vld [vmem:[#allocation9 + $0x18] sm:$0xff]  ;;  %v167_v45 = vld [vmem:[#allocation9 + $0x10] sm:$0xff]  ;;  %v165_v47 = vld [vmem:[#allocation9] sm:$0xff] }
  0xb4   :  { %366 = vmatpush.msra.mxu1 %v168_v44  ;;  %574 = vmatpush.msra.mxu3 %v168_v44 }
  0xb5   :  { %v270_v53 = vadd.f32 %v268_v50, %v256_v49  ;;  %335 = vrot.lane.b32.xlu0 %v1486_v51, %s1305_s4  ;;  %v227_v57 = vperm.slane %v1486_v51, 0  ;;  %v239_v59 = vperm.slane %v1486_v51, 1  ;;  %v253_v4 = vperm.slane %v1486_v51, 2 }
  0xb6   :  { %v267_v12 = vperm.slane %v1486_v51, 3  ;;  %v281_v16 = vperm.slane %v1486_v51, 4  ;;  %v295_v26 = vperm.slane %v1486_v51, 5  ;;  %v323_v34 = vperm.slane %v1486_v51, 7  ;;  %367 = vmatpush.msra.mxu1 %v167_v45  ;;  %575 = vmatpush.msra.mxu3 %v167_v45  ;;  %v176_v45 = vld [vmem:[#allocation10 + $0x18] sm:$0xff] }
  0xb7   :  { %v284_v60 = vadd.f32 %v282_v54, %v270_v53  ;;  %v229_v0 = vmul.f32 %v227_v57, %v1464_v27  ;;  %v241_v1 = vmul.f32 %v239_v59, %v1460_v23  ;;  %v255_v11 = vmul.f32 %v253_v4, %v1466_v31  ;;  %v1535_v53 = vld [vmem:[%s1677_s6] ss:$0 sm:$0xff]  ;;  %s1306_s6 = smov 96   ;;  %439 = vmatpush.msra.mxu2 %v176_v45 }
  0xb8   :  { %v1500_v63 = vpop.permute.xlu1 %263  ;;  %v297_v30 = vmul.f32 %v295_v26, %v1509_v13  ;;  %v309_v35 = vperm.slane %v1486_v51, 6  ;;  %v325_v41 = vmul.f32 %v323_v34, %v1521_v36  ;;  %368 = vmatpush.msra.mxu1 %v166_v46  ;;  %576 = vmatpush.msra.mxu3 %v166_v46  ;;  %v175_v46 = vld [vmem:[#allocation10 + $0x10] sm:$0xff] }
  0xb9   :  { %v298_v3 = vadd.f32 %v296_v62, %v284_v60  ;;  %v243_v9 = vadd.f32 %v241_v1, %v229_v0  ;;  %v269_v22 = vmul.f32 %v267_v12, %v1500_v63  ;;  %647 = vmatpush.msrb.mxu0 %v176_v45  ;;  %440 = vmatpush.msra.mxu2 %v175_v46 }
  0xba   :  { %369 = vmatpush.msra.mxu1 %v165_v47  ;;  %577 = vmatpush.msra.mxu3 %v165_v47  ;;  %v174_v47 = vld [vmem:[#allocation10 + $0x8] sm:$0xff] }
  0xbb   :  { %v312_v7 = vadd.f32 %v310_v2, %v298_v3  ;;  %v257_v14 = vadd.f32 %v255_v11, %v243_v9  ;;  %648 = vmatpush.msrb.mxu0 %v175_v46  ;;  %441 = vmatpush.msra.mxu2 %v174_v47 }
  0xbd   :  { %v326_v10 = vadd.f32 %v324_v6, %v312_v7  ;;  %v271_v28 = vadd.f32 %v269_v22, %v257_v14  ;;  %649 = vmatpush.msrb.mxu0 %v174_v47 }
  0xbf   :  { %329 = vst.msk [vmem:[#allocation2] sm:$0xff] %vm328_vm1, %v326_v10 }
  0xc1   :  { %v1512_v15 = vpop.permute.xlu1 %277 }
  0xc2   :  { %v283_v24 = vmul.f32 %v281_v16, %v1512_v15 }
  0xc4   :  { %v285_v29 = vadd.f32 %v283_v24, %v271_v28 }
  0xc6   :  { %v299_v39 = vadd.f32 %v297_v30, %v285_v29 }
  0xca   :  { %v1523_v38 = vpop.permute.xlu1 %305 }
  0xcb   :  { %v311_v40 = vmul.f32 %v309_v35, %v1523_v38 }
  0xcd   :  { %v313_v42 = vadd.f32 %v311_v40, %v299_v39 }
  0xcf   :  { %v327_v43 = vadd.f32 %v325_v41, %v313_v42 }
  0xd1   :  { %330 = vst.msk [vmem:[#allocation2 + $0x8] sm:$0xff] %vm328_vm1, %v327_v43 }
 0x11f   :  { %v334_v48 = vpop.permute.xlu0 %333 }
 0x120   :  { %340 = vst.msk [vmem:[#allocation2] sm:$0xff] %vm339_vm2, %v334_v48 }
 0x127   :  { %v336_v49 = vpop.permute.xlu0 %335  ;;  %v342_v50 = vld [vmem:[#allocation2] sm:$0xff] }
 0x128   :  { %341 = vst.msk [vmem:[#allocation2 + $0x8] sm:$0xff] %vm339_vm2, %v336_v49  ;;  %975 = vmatmul.msk.f32.vlgmr.msra.gmra.mxu1 %vm347_vm3, %v342_v50 }
 0x12f   :  { %v343_v52 = vld [vmem:[#allocation2 + $0x8] sm:$0xff] }
 0x130   :  { %976 = vmatmul.msk.f32.gmra.mxu1 %vm347_vm3, %v343_v52 }
 0x1a5   :  { %v371_v54 = vpop.f32.mrf.mxu1 }
 0x1a6   :  { %v1538_v56 = vadd.f32 %v1535_v53, %v371_v54 }
 0x1a8   :  { %v977_v57 = vmul.f32 -1.442695, %v1538_v56 }
 0x1aa   :  { %1045 = vpow2.f32 %v977_v57 }
 0x1ad   :  { %v374_v59 = vpop.f32.mrf.mxu1 }
 0x1ae   :  { %v1542_v60 = vadd.f32 %v1535_v53, %v374_v59 }
 0x1b0   :  { %v1046_v61 = vpop.eup %1045  ;;  %v978_v62 = vmul.f32 -1.442695, %v1542_v60 }
 0x1b1   :  { %v383_v0 = vadd.f32 1.0, %v1046_v61 }
 0x1b2   :  { %1047 = vpow2.f32 %v978_v62 }
 0x1b3   :  { %1049 = vrcp.f32 %v383_v0  ;;  %v396_v7 = vand.u32 2147483648, %v383_v0  ;;  %v394_v10 = vand.u32 2147483647, %v383_v0  ;;  %vm390_vm5 = vweird.f32 %v383_v0 }
 0x1b5   :  { %v397_v14 = vor.u32 1.1754944e-38, %v396_v7  ;;  %vm395_vm7 = vcmp.eq.f32.partialorder %v394_v10, 8.507059e+37 }
 0x1b8   :  { %v1048_v1 = vpop.eup %1047 }
 0x1b9   :  { %v1050_v2 = vpop.eup %1049  ;;  %v384_v3 = vadd.f32 1.0, %v1048_v1 }
 0x1ba   :  { %v386_v4 = vmul.f32 %v1050_v2, %v383_v0  ;;  %vm391_vm4 = vweird.f32 %v1050_v2 }
 0x1bb   :  { %1051 = vrcp.f32 %v384_v3  ;;  %vm392_vm6 = vmor %vm390_vm5, %vm391_vm4  ;;  %v411_v29 = vand.u32 2147483648, %v384_v3  ;;  %v409_v34 = vand.u32 2147483647, %v384_v3  ;;  %vm405_vm9 = vweird.f32 %v384_v3 }
 0x1bc   :  { %v387_v6 = vsub.f32 1.0, %v386_v4  ;;  %vm809_vm5 = vcmask 7168  }
 0x1bd   :  { %v412_v39 = vor.u32 1.1754944e-38, %v411_v29  ;;  %vm410_vm11 = vcmp.eq.f32.partialorder %v409_v34, 8.507059e+37 }
 0x1be   :  { %v388_v9 = vmul.f32 %v1050_v2, %v387_v6 }
 0x1c0   :  { %v389_v11 = vadd.f32 %v1050_v2, %v388_v9 }
 0x1c1   :  { %v1052_v12 = vpop.eup %1051 }
 0x1c2   :  { %v401_v16 = vmul.f32 %v1052_v12, %v384_v3  ;;  %v393_v22 = vsel %vm392_vm6, %v1050_v2, %v389_v11  ;;  %vm406_vm8 = vweird.f32 %v1052_v12 }
 0x1c3   :  { %v398_v24 = vsel %vm395_vm7, %v397_v14, %v393_v22  ;;  %vm407_vm10 = vmor %vm405_vm9, %vm406_vm8 }
 0x1c4   :  { %v415_v26 = vmul.f32 %v398_v24, %v334_v48  ;;  %v402_v28 = vsub.f32 1.0, %v401_v16  ;;  %v173_v48 = vld [vmem:[#allocation10] sm:$0xff]  ;;  %v474_v52 = vsub.f32 1.0, %v398_v24 }
 0x1c5   :  { %442 = vmatpush.msra.mxu2 %v173_v48  ;;  %650 = vmatpush.msrb.mxu0 %v173_v48 }
 0x1c6   :  { %419 = vrot.lane.b32.xlu1 %v415_v26, %s1306_s6  ;;  %v403_v30 = vmul.f32 %v1052_v12, %v402_v28  ;;  %v476_v54 = vmul.f32 %v474_v52, %v1469_v32 }
 0x1c8   :  { %v404_v35 = vadd.f32 %v1052_v12, %v403_v30 }
 0x1ca   :  { %v408_v40 = vsel %vm407_vm10, %v1052_v12, %v404_v35 }
 0x1cb   :  { %v413_v41 = vsel %vm410_vm11, %v412_v39, %v408_v40 }
 0x1cc   :  { %v416_v42 = vmul.f32 %v413_v41, %v336_v49  ;;  %v475_v43 = vsub.f32 1.0, %v413_v41 }
 0x1ce   :  { %421 = vrot.lane.b32.xlu2 %v416_v42, %s1306_s6  ;;  %v477_v44 = vmul.f32 %v475_v43, %v1486_v51 }
 0x1d6   :  { %466 = vrot.lane.b32.xlu2 %v398_v24, %s1307_s23 }
 0x1de   :  { %482 = vrot.lane.b32.xlu2 %v477_v44, %s1307_s23 }
 0x228   :  { %v422_v50 = vpop.permute.xlu2 %421 }
 0x230   :  { %v467_v3 = vpop.permute.xlu2 %466 }
 0x238   :  { %v420_v49 = vpop.permute.xlu1 %419  ;;  %v483_v29 = vpop.permute.xlu2 %482 }
 0x239   :  { %979 = vmatmul.msk.f32.vlgmr.msra.gmra.mxu2 %vm328_vm1, %v420_v49 }
 0x241   :  { %980 = vmatmul.msk.f32.gmra.mxu2 %vm328_vm1, %v422_v50 }
 0x2bc   :  { %v444_v51 = vpop.f32.mrf.mxu2 }
 0x2bd   :  { %452 = vrot.lane.b32.xlu0 %v444_v51, %s1307_s23 }
 0x2c4   :  { %v447_v57 = vpop.f32.mrf.mxu2 }
 0x2c5   :  { %480 = vrot.lane.b32.xlu0 %v476_v54, %s1307_s23  ;;  %454 = vrot.lane.b32.xlu1 %v447_v57, %s1307_s23 }
 0x2cd   :  { %468 = vrot.lane.b32.xlu1 %v413_v41, %s1307_s23 }
 0x32f   :  { %v453_v59 = vpop.permute.xlu0 %452 }
 0x330   :  { %v458_v61 = vadd.f32 %v453_v59, %v1538_v56 }
 0x332   :  { %v460_v62 = vmul.f32 %v458_v61, %v1453_v20 }
 0x334   :  { %1053 = vtanh.f32 %v460_v62 }
 0x337   :  { %v455_v0 = vpop.permute.xlu1 %454  ;;  %v481_v6 = vpop.permute.xlu0 %480 }
 0x338   :  { %v459_v1 = vadd.f32 %v455_v0, %v1542_v60 }
 0x33a   :  { %v1054_v2 = vpop.eup %1053  ;;  %v461_v32 = vmul.f32 %v459_v1, %v1462_v25 }
 0x33b   :  { %v472_v4 = vmul.f32 %v1054_v2, %v467_v3 }
 0x33c   :  { %1055 = vtanh.f32 %v461_v32 }
 0x33d   :  { %v1561_v7 = vadd.f32 %v481_v6, %v472_v4 }
 0x33f   :  { %546 = vrot.lane.b32.xlu1 %v1561_v7, %s1306_s6  ;;  %v488_v56 = vperm.slane %v1561_v7, 0  ;;  %v492_v9 = vperm.slane %v1561_v7, 1  ;;  %v498_v10 = vperm.slane %v1561_v7, 2  ;;  %v504_v12 = vperm.slane %v1561_v7, 3  ;;  %v469_v16 = vpop.permute.xlu1 %468 }
 0x340   :  { %v510_v22 = vperm.slane %v1561_v7, 4  ;;  %v516_v30 = vperm.slane %v1561_v7, 5  ;;  %v522_v39 = vperm.slane %v1561_v7, 6  ;;  %v528_v44 = vperm.slane %v1561_v7, 7 }
 0x341   :  { %v490_v60 = vmul.f32 %v488_v56, %v1449_v18  ;;  %v494_v11 = vmul.f32 %v492_v9, %v1455_v21  ;;  %v500_v28 = vmul.f32 %v498_v10, %v1447_v17  ;;  %v506_v18 = vmul.f32 %v504_v12, %v1451_v19 }
 0x342   :  { %v1056_v14 = vpop.eup %1055  ;;  %v512_v21 = vmul.f32 %v510_v22, %v1471_v33  ;;  %v518_v17 = vmul.f32 %v516_v30, %v1477_v37  ;;  %v524_v47 = vmul.f32 %v522_v39, %v1495_v58  ;;  %v530_v52 = vmul.f32 %v528_v44, %v1490_v55 }
 0x343   :  { %v473_v24 = vmul.f32 %v1056_v14, %v469_v16  ;;  %v496_v26 = vadd.f32 %v494_v11, %v490_v60 }
 0x345   :  { %v1574_v34 = vadd.f32 %v483_v29, %v473_v24  ;;  %v502_v35 = vadd.f32 %v500_v28, %v496_v26 }
 0x347   :  { %v508_v40 = vadd.f32 %v506_v18, %v502_v35  ;;  %v489_v41 = vperm.slane %v1574_v34, 0  ;;  %v493_v42 = vperm.slane %v1574_v34, 1  ;;  %v499_v43 = vperm.slane %v1574_v34, 2 }
 0x348   :  { %v505_v33 = vperm.slane %v1574_v34, 3  ;;  %v511_v51 = vperm.slane %v1574_v34, 4  ;;  %v523_v58 = vperm.slane %v1574_v34, 6  ;;  %v529_v0 = vperm.slane %v1574_v34, 7 }
 0x349   :  { %v514_v45 = vadd.f32 %v512_v21, %v508_v40  ;;  %v491_v46 = vmul.f32 %v489_v41, %v1464_v27  ;;  %v495_v19 = vmul.f32 %v493_v42, %v1460_v23  ;;  %v501_v50 = vmul.f32 %v499_v43, %v1466_v31 }
 0x34a   :  { %v507_v57 = vmul.f32 %v505_v33, %v1500_v63  ;;  %v517_v27 = vperm.slane %v1574_v34, 5  ;;  %v513_v61 = vmul.f32 %v511_v51, %v1512_v15  ;;  %v525_v1 = vmul.f32 %v523_v58, %v1523_v38 }
 0x34b   :  { %v520_v48 = vadd.f32 %v518_v17, %v514_v45  ;;  %v497_v49 = vadd.f32 %v495_v19, %v491_v46  ;;  %v531_v63 = vmul.f32 %v529_v0, %v1521_v36 }
 0x34c   :  { %v519_v31 = vmul.f32 %v517_v27, %v1509_v13 }
 0x34d   :  { %v526_v37 = vadd.f32 %v524_v47, %v520_v48  ;;  %v503_v54 = vadd.f32 %v501_v50, %v497_v49 }
 0x34f   :  { %v532_v59 = vadd.f32 %v530_v52, %v526_v37  ;;  %v509_v23 = vadd.f32 %v507_v57, %v503_v54  ;;  %v1037_v57 = vld [vmem:[%s1679_s8] ss:$0 sm:$0xff] }
 0x351   :  { %536 = vrot.lane.b32.xlu0 %v532_v59, %s1307_s23  ;;  %v515_v62 = vadd.f32 %v513_v61, %v509_v23 }
 0x353   :  { %v521_v55 = vadd.f32 %v519_v31, %v515_v62 }
 0x355   :  { %v527_v2 = vadd.f32 %v525_v1, %v521_v55 }
 0x357   :  { %v533_v3 = vadd.f32 %v531_v63, %v527_v2 }
 0x359   :  { %548 = vrot.lane.b32.xlu0 %v1574_v34, %s1306_s6  ;;  %538 = vrot.lane.b32.xlu2 %v533_v3, %s1307_s23 }
 0x3b1   :  { %v547_v4 = vpop.permute.xlu1 %546 }
 0x3b3   :  { %v539_v15 = vpop.permute.xlu2 %538 }
 0x3b4   :  { %543 = vst.msk [vmem:[#allocation2 + $0x8] sm:$0xff] %vm328_vm1, %v539_v15 }
 0x3c3   :  { %v537_v32 = vpop.permute.xlu0 %536 }
 0x3c4   :  { %542 = vst.msk [vmem:[#allocation2] sm:$0xff] %vm328_vm1, %v537_v32 }
 0x3c5   :  { %552 = vst.msk [vmem:[#allocation2] sm:$0xff] %vm339_vm2, %v547_v4 }
 0x3cb   :  { %v549_v13 = vpop.permute.xlu0 %548 }
 0x3cc   :  { %553 = vst.msk [vmem:[#allocation2 + $0x8] sm:$0xff] %vm339_vm2, %v549_v13  ;;  %v554_v38 = vld [vmem:[#allocation2] sm:$0xff] }
 0x3cd   :  { %981 = vmatmul.msk.f32.vlgmr.msra.gmra.mxu3 %vm347_vm3, %v554_v38 }
 0x3d3   :  { %v555_v36 = vld [vmem:[#allocation2 + $0x8] sm:$0xff] }
 0x3d5   :  { %982 = vmatmul.msk.f32.gmra.mxu3 %vm347_vm3, %v555_v36 }
 0x450   :  { %v579_v6 = vpop.f32.mrf.mxu3 }
 0x451   :  { %v580_v56 = vadd.f32 %v1535_v53, %v579_v6  ;;  %v774_v6 = vld [vmem:[#allocation12 + $0x10] sm:$0xff] }
 0x453   :  { %v983_v9 = vmul.f32 -1.442695, %v580_v56 }
 0x455   :  { %1057 = vpow2.f32 %v983_v9  ;;  %v772_v9 = vld [vmem:[#allocation12] sm:$0xff] }
 0x458   :  { %v582_v10 = vpop.f32.mrf.mxu3 }
 0x459   :  { %v1611_v60 = vadd.f32 %v1535_v53, %v582_v10 }
 0x45b   :  { %v1058_v11 = vpop.eup %1057  ;;  %v984_v12 = vmul.f32 -1.442695, %v1611_v60 }
 0x45c   :  { %v591_v14 = vadd.f32 1.0, %v1058_v11 }
 0x45d   :  { %1059 = vpow2.f32 %v984_v12 }
 0x45e   :  { %1061 = vrcp.f32 %v591_v14  ;;  %v604_v29 = vand.u32 2147483648, %v591_v14  ;;  %v602_v35 = vand.u32 2147483647, %v591_v14  ;;  %vm598_vm13 = vweird.f32 %v591_v14 }
 0x460   :  { %v605_v21 = vor.u32 1.1754944e-38, %v604_v29  ;;  %vm603_vm15 = vcmp.eq.f32.partialorder %v602_v35, 8.507059e+37 }
 0x463   :  { %v1060_v16 = vpop.eup %1059 }
 0x464   :  { %v1062_v22 = vpop.eup %1061  ;;  %v592_v24 = vadd.f32 1.0, %v1060_v16 }
 0x465   :  { %v594_v26 = vmul.f32 %v1062_v22, %v591_v14  ;;  %vm599_vm12 = vweird.f32 %v1062_v22 }
 0x466   :  { %1063 = vrcp.f32 %v592_v24  ;;  %vm600_vm14 = vmor %vm598_vm13, %vm599_vm12  ;;  %v619_v17 = vand.u32 2147483648, %v592_v24  ;;  %v617_v45 = vand.u32 2147483647, %v592_v24  ;;  %vm613_vm2 = vweird.f32 %v592_v24 }
 0x467   :  { %v595_v28 = vsub.f32 1.0, %v594_v26 }
 0x468   :  { %v620_v19 = vor.u32 1.1754944e-38, %v619_v17  ;;  %vm618_vm4 = vcmp.eq.f32.partialorder %v617_v45, 8.507059e+37 }
 0x469   :  { %v596_v30 = vmul.f32 %v1062_v22, %v595_v28 }
 0x46b   :  { %v597_v18 = vadd.f32 %v1062_v22, %v596_v30 }
 0x46c   :  { %v1064_v53 = vpop.eup %1063 }
 0x46d   :  { %v609_v39 = vmul.f32 %v1064_v53, %v592_v24  ;;  %v601_v40 = vsel %vm600_vm14, %v1062_v22, %v597_v18  ;;  %vm614_vm0 = vweird.f32 %v1064_v53  ;;  %vm910_vm14 = vcmask 1041409  }
 0x46e   :  { %v606_v41 = vsel %vm603_vm15, %v605_v21, %v601_v40  ;;  %vm615_vm3 = vmor %vm613_vm2, %vm614_vm0 }
 0x46f   :  { %v623_v42 = vmul.f32 %v606_v41, %v547_v4  ;;  %v610_v43 = vsub.f32 1.0, %v609_v39  ;;  %v682_v37 = vsub.f32 1.0, %v606_v41  ;;  %v1038_v39 = vld [vmem:[#allocation3] ss:$0 sm:$0xff] }
 0x471   :  { %627 = vrot.lane.b32.xlu1 %v623_v42, %s1306_s6  ;;  %v611_v44 = vmul.f32 %v1064_v53, %v610_v43 }
 0x473   :  { %v612_v46 = vadd.f32 %v1064_v53, %v611_v44 }
 0x475   :  { %v616_v33 = vsel %vm615_vm3, %v1064_v53, %v612_v46  ;;  %v991_v53 = vadd.f32 -1.0, %v1432_v5 }
 0x476   :  { %v621_v47 = vsel %vm618_vm4, %v620_v19, %v616_v33  ;;  %v810_v19 = vsel %vm809_vm5, %v1432_v5, 0.0 }
 0x477   :  { %v624_v48 = vmul.f32 %v621_v47, %v549_v13  ;;  %v683_v49 = vsub.f32 1.0, %v621_v47  ;;  %v830_v21 = vmul.f32 1e+09, %v991_v53 }
 0x479   :  { %629 = vrot.lane.b32.xlu2 %v624_v48, %s1306_s6 }
 0x481   :  { %674 = vrot.lane.b32.xlu2 %v606_v41, %s1307_s23 }
 0x489   :  { %688 = vrot.lane.b32.xlu2 %v683_v49, %s1307_s23  ;;  %v811_v49 = vrot.slane %v810_v19, 4 }
 0x4d3   :  { %v630_v51 = vpop.permute.xlu2 %629 }
 0x4db   :  { %v675_v61 = vpop.permute.xlu2 %674 }
 0x4e3   :  { %v628_v50 = vpop.permute.xlu1 %627  ;;  %v689_v15 = vpop.permute.xlu2 %688 }
 0x4e4   :  { %985 = vmatmul.msk.f32.vlgmr.msrb.gmra.mxu0 %vm328_vm1, %v628_v50  ;;  %v693_v13 = vmul.f32 %v689_v15, %v1574_v34  ;;  %v817_v34 = vsel %vm809_vm5, %v1441_v8, 0.0 }
 0x4ec   :  { %986 = vmatmul.msk.f32.gmra.mxu0 %vm328_vm1, %v630_v51 }
 0x561   :  { %v652_v52 = vpop.f32.mrf.mxu0 }
 0x562   :  { %660 = vrot.lane.b32.xlu0 %v652_v52, %s1307_s23  ;;  %v812_v52 = vadd.f32 %v811_v49, %v810_v19 }
 0x569   :  { %v655_v54 = vpop.f32.mrf.mxu0 }
 0x56a   :  { %686 = vrot.lane.b32.xlu0 %v682_v37, %s1307_s23  ;;  %662 = vrot.lane.b32.xlu1 %v655_v54, %s1307_s23 }
 0x572   :  { %709 = vrot.lane.b32.xlu0 %v1037_v57, %s1307_s23  ;;  %676 = vrot.lane.b32.xlu1 %v621_v47, %s1307_s23 }
 0x5d4   :  { %v661_v27 = vpop.permute.xlu0 %660 }
 0x5d5   :  { %v666_v59 = vadd.f32 %v661_v27, %v580_v56  ;;  %v773_v56 = vld [vmem:[#allocation12 + $0x8] sm:$0xff] }
 0x5d7   :  { %v668_v23 = vmul.f32 %v666_v59, %v1453_v20 }
 0x5d9   :  { %1065 = vtanh.f32 %v668_v23  ;;  %v813_v23 = vrot.slane %v812_v52, 2 }
 0x5dc   :  { %v687_v58 = vpop.permute.xlu0 %686  ;;  %v663_v62 = vpop.permute.xlu1 %662 }
 0x5dd   :  { %v667_v31 = vadd.f32 %v663_v62, %v1611_v60  ;;  %v692_v2 = vmul.f32 %v687_v58, %v1561_v7  ;;  %v775_v7 = vld [vmem:[#allocation12 + $0x18] sm:$0xff]  ;;  %v818_v60 = vrot.slane %v817_v34, 4 }
 0x5de   :  { %796 = vmatpush.msrb.mxu2 %v775_v7 }
 0x5df   :  { %v1066_v0 = vpop.eup %1065  ;;  %v669_v55 = vmul.f32 %v667_v31, %v1462_v25  ;;  %v819_v11 = vadd.f32 %v818_v60, %v817_v34  ;;  %v903_v60 = vld [vmem:[#allocation13 + $0x18] sm:$0xff] }
 0x5e0   :  { %v680_v1 = vmul.f32 %v1066_v0, %v675_v61  ;;  %797 = vmatpush.msrb.mxu2 %v774_v6  ;;  %926 = vmatpush.msrb.mxu1 %v903_v60 }
 0x5e1   :  { %1067 = vtanh.f32 %v669_v55  ;;  %v820_v12 = vrot.slane %v819_v11, 2 }
 0x5e2   :  { %v694_v63 = vadd.f32 %v692_v2, %v680_v1  ;;  %798 = vmatpush.msrb.mxu2 %v773_v56  ;;  %v814_v2 = vadd.f32 %v813_v23, %v812_v52 }
 0x5e3   :  { %v821_v22 = vadd.f32 %v820_v12, %v819_v11  ;;  %v902_v11 = vld [vmem:[#allocation13 + $0x10] sm:$0xff] }
 0x5e4   :  { %v710_v3 = vpop.permute.xlu0 %709  ;;  %698 = vrot.lane.b32.xlu1 %v694_v63, %s1307_s23  ;;  %v677_v4 = vpop.permute.xlu1 %676  ;;  %799 = vmatpush.msrb.mxu2 %v772_v9  ;;  %v1039_v9 = vld [vmem:[%s1682_s11] ss:$0 sm:$0xff] }
 0x5e5   :  { %v712_v32 = vmul.f32 %v710_v3, %v694_v63  ;;  %v822_v26 = vrot.slane %v821_v22, 1  ;;  %927 = vmatpush.msrb.mxu1 %v902_v11 }
 0x5e7   :  { %v1068_v20 = vpop.eup %1067  ;;  %716 = vrot.lane.b32.xlu0 %v712_v32, %s1307_s23  ;;  %v823_v30 = vadd.f32 %v822_v26, %v821_v22  ;;  %v901_v22 = vld [vmem:[#allocation13 + $0x8] sm:$0xff] }
 0x5e8   :  { %v681_v38 = vmul.f32 %v1068_v20, %v677_v4  ;;  %v815_v20 = vrot.slane %v814_v2, 1  ;;  %928 = vmatpush.msrb.mxu1 %v901_v22 }
 0x5e9   :  { %v825_v35 = vmax.f32 %v823_v30, 1.0 }
 0x5ea   :  { %v695_v36 = vadd.f32 %v693_v13, %v681_v38 }
 0x5eb   :  { %1069 = vrcp.f32 %v825_v35 }
 0x5ec   :  { %700 = vrot.lane.b32.xlu2 %v695_v36, %s1307_s23  ;;  %v713_v25 = vmul.f32 %v710_v3, %v695_v36  ;;  %v816_v36 = vadd.f32 %v815_v20, %v814_v2 }
 0x5ee   :  { %718 = vrot.lane.b32.xlu1 %v713_v25, %s1307_s23  ;;  %v824_v25 = vmax.f32 %v816_v36, 1.0 }
 0x5f1   :  { %v1070_v18 = vpop.eup %1069 }
 0x5f6   :  { %874 = vperm.xlu1 %1032, %v830_v21  }
 0x646   :  { %v701_v10 = vpop.permute.xlu2 %700 }
 0x647   :  { %705 = vst.msk [vmem:[#allocation15 + $0x8] sm:$0xff] %vm328_vm1, %v701_v10 }
 0x656   :  { %v699_v14 = vpop.permute.xlu1 %698 }
 0x657   :  { %704 = vst.msk [vmem:[#allocation15] sm:$0xff] %vm328_vm1, %v699_v14  ;;  %989 = vmatmul.msk.f32.vlgmr.msrb.gmra.mxu2 %vm328_vm1, %v699_v14 }
 0x658   :  { %947 = dma.vmem_to_hbm [thread:$0]  %s940_s30, 256, %s942_s27, [#allocation6], %s1290_s9, %s1290_s9, %s1291_s28  }
 0x659   :  { %v717_v16 = vpop.permute.xlu0 %716 }
 0x65a   :  { %v722_v24 = vsel %vm328_vm1, %v717_v16, 0.0 }
 0x65b   :  { %723 = vadd.xlane.f32.xlu2 %v722_v24  ;;  %v900_v24 = vld [vmem:[#allocation13] sm:$0xff] }
 0x65c   :  { %929 = vmatpush.msrb.mxu1 %v900_v24 }
 0x65f   :  { %990 = vmatmul.msk.f32.gmra.mxu2 %vm328_vm1, %v701_v10 }
 0x660   :  { %v719_v28 = vpop.permute.xlu1 %718 }
 0x661   :  { %v725_v29 = vsel %vm328_vm1, %v719_v28, 0.0 }
 0x662   :  { %726 = vadd.xlane.f32.xlu0 %v725_v29 }
 0x668   :  { %v875_v34 = vpop.permute.xlu1 %874 }
 0x673   :  { %867 = vperm.xlu2 %1033, %v1070_v18  }
 0x6ce   :  { %v724_v40 = vpop.xlane.xlu2 %723 }
 0x6cf   :  { %v732_v41 = vadd.f32 %v1038_v39, %v724_v40 }
 0x6d1   :  { %v987_v42 = vmul.f32 -1.442695, %v732_v41 }
 0x6d3   :  { %1071 = vpow2.f32 %v987_v42 }
 0x6d5   :  { %v727_v43 = vpop.xlane.xlu0 %726 }
 0x6d6   :  { %v733_v17 = vadd.f32 %v1038_v39, %v727_v43 }
 0x6d8   :  { %v988_v44 = vmul.f32 -1.442695, %v733_v17 }
 0x6d9   :  { %v1072_v45 = vpop.eup %1071 }
 0x6da   :  { %v740_v46 = vadd.f32 1.0, %v1072_v45  ;;  %1073 = vpow2.f32 %v988_v44  ;;  %v801_v56 = vpop.f32.mrf.mxu2 }
 0x6db   :  { %v802_v10 = vadd.f32 %v1039_v9, %v801_v56 }
 0x6dc   :  { %1075 = vrcp.f32 %v740_v46  ;;  %v753_v37 = vand.u32 2147483648, %v740_v46  ;;  %v751_v57 = vand.u32 2147483647, %v740_v46  ;;  %vm747_vm7 = vweird.f32 %v740_v46 }
 0x6de   :  { %v754_v58 = vor.u32 1.1754944e-38, %v753_v37  ;;  %vm752_vm9 = vcmp.eq.f32.partialorder %v751_v57, 8.507059e+37 }
 0x6e0   :  { %v1074_v33 = vpop.eup %1073 }
 0x6e1   :  { %v741_v47 = vadd.f32 1.0, %v1074_v33 }
 0x6e2   :  { %v1076_v48 = vpop.eup %1075  ;;  %v804_v12 = vpop.f32.mrf.mxu2 }
 0x6e3   :  { %v743_v50 = vmul.f32 %v1076_v48, %v740_v46  ;;  %1077 = vrcp.f32 %v741_v47  ;;  %vm748_vm6 = vweird.f32 %v1076_v48  ;;  %v768_v1 = vand.u32 2147483648, %v741_v47 }
 0x6e4   :  { %vm749_vm8 = vmor %vm747_vm7, %vm748_vm6  ;;  %v766_v3 = vand.u32 2147483647, %v741_v47  ;;  %vm762_vm11 = vweird.f32 %v741_v47  ;;  %1079 = vrcp.f32 %v824_v25 }
 0x6e5   :  { %v744_v51 = vsub.f32 1.0, %v743_v50  ;;  %v769_v32 = vor.u32 1.1754944e-38, %v768_v1  ;;  %1081 = vtanh.f32 %v802_v10 }
 0x6e6   :  { %vm767_vm13 = vcmp.eq.f32.partialorder %v766_v3, 8.507059e+37 }
 0x6e7   :  { %v745_v54 = vmul.f32 %v1076_v48, %v744_v51 }
 0x6e9   :  { %v1078_v27 = vpop.eup %1077  ;;  %v746_v59 = vadd.f32 %v1076_v48, %v745_v54 }
 0x6ea   :  { %v758_v61 = vmul.f32 %v1078_v27, %v741_v47  ;;  %vm763_vm10 = vweird.f32 %v1078_v27  ;;  %v1080_v6 = vpop.eup %1079 }
 0x6eb   :  { %v750_v62 = vsel %vm749_vm8, %v1076_v48, %v746_v59  ;;  %vm764_vm12 = vmor %vm762_vm11, %vm763_vm10  ;;  %v1082_v14 = vpop.eup %1081 }
 0x6ec   :  { %v755_v31 = vsel %vm752_vm9, %v754_v58, %v750_v62  ;;  %v759_v0 = vsub.f32 1.0, %v758_v61  ;;  %v868_v62 = vpop.permute.xlu2 %867 }
 0x6ed   :  { %v832_v55 = vmul.f32 %v755_v31, %v1432_v5  ;;  %v992_v5 = vadd.f32 -1.0, %v1441_v8 }
 0x6ee   :  { %v760_v63 = vmul.f32 %v1078_v27, %v759_v0 }
 0x6ef   :  { %836 = vperm.xlu1 %1032, %v832_v55   ;;  %v831_v7 = vmul.f32 1e+09, %v992_v5 }
 0x6f0   :  { %v761_v15 = vadd.f32 %v1078_v27, %v760_v63 }
 0x6f2   :  { %v765_v4 = vsel %vm764_vm12, %v1078_v27, %v761_v15 }
 0x6f3   :  { %v770_v13 = vsel %vm767_vm13, %v769_v32, %v765_v4  ;;  %v1040_v32 = vld [vmem:[%s1684_s13] ss:$0 sm:$0xff] }
 0x6f4   :  { %v833_v38 = vmul.f32 %v770_v13, %v1441_v8  ;;  %v805_v8 = vadd.f32 %v1039_v9, %v804_v12 }
 0x6f6   :  { %1083 = vtanh.f32 %v805_v8 }
 0x6f7   :  { %841 = vperm.xlu1 %1032, %v833_v38  }
 0x6fc   :  { %v1084_v18 = vpop.eup %1083 }
 0x6ff   :  { %879 = vperm.xlu1 %1032, %v831_v7  }
 0x707   :  { %862 = vperm.xlu1 %1032, %v1080_v6  }
 0x761   :  { %v837_v16 = vpop.permute.xlu1 %836 }
 0x762   :  { %v844_v26 = vmul.f32 %v1082_v14, %v837_v16 }
 0x764   :  { %v846_v28 = vsel %vm328_vm1, %v844_v26, 0.0  ;;  %v882_v29 = vadd.f32 %v875_v34, %v844_v26 }
 0x765   :  { %v847_v30 = vrot.slane %v846_v28, 4 }
 0x766   :  { %v884_v35 = vsel %vm328_vm1, %v882_v29, -inf }
 0x767   :  { %v848_v39 = vadd.f32 %v847_v30, %v846_v28  ;;  %v885_v40 = vrot.slane %v884_v35, 4 }
 0x769   :  { %v842_v53 = vpop.permute.xlu1 %841  ;;  %v849_v43 = vrot.slane %v848_v39, 2  ;;  %v886_v17 = vmax.f32 %v884_v35, %v885_v40 }
 0x76a   :  { %v845_v21 = vmul.f32 %v1084_v18, %v842_v53 }
 0x76b   :  { %v887_v33 = vrot.slane %v886_v17, 2  ;;  %v850_v48 = vadd.f32 %v849_v43, %v848_v39 }
 0x76c   :  { %v853_v41 = vsel %vm328_vm1, %v845_v21, 0.0 }
 0x76d   :  { %v854_v42 = vrot.slane %v853_v41, 4  ;;  %v851_v37 = vrot.slane %v850_v48, 1  ;;  %v888_v54 = vmax.f32 %v886_v17, %v887_v33 }
 0x76f   :  { %v855_v44 = vadd.f32 %v854_v42, %v853_v41  ;;  %v852_v61 = vadd.f32 %v851_v37, %v850_v48  ;;  %v889_v58 = vrot.slane %v888_v54, 1 }
 0x771   :  { %v856_v45 = vrot.slane %v855_v44, 2  ;;  %v880_v46 = vpop.permute.xlu1 %879  ;;  %v890_v2 = vmax.f32 %v888_v54, %v889_v58 }
 0x772   :  { %v883_v19 = vadd.f32 %v880_v46, %v845_v21 }
 0x773   :  { %v857_v47 = vadd.f32 %v856_v45, %v855_v44 }
 0x774   :  { %v891_v49 = vsel %vm328_vm1, %v883_v19, -inf }
 0x775   :  { %v892_v50 = vrot.slane %v891_v49, 4  ;;  %v858_v52 = vrot.slane %v857_v47, 1 }
 0x777   :  { %v893_v51 = vmax.f32 %v891_v49, %v892_v50  ;;  %v859_v23 = vadd.f32 %v858_v52, %v857_v47 }
 0x779   :  { %v894_v57 = vrot.slane %v893_v51, 2  ;;  %v863_v27 = vpop.permute.xlu1 %862  ;;  %v871_v55 = vmul.f32 %v868_v62, %v859_v23 }
 0x77a   :  { %v870_v0 = vmul.f32 %v863_v27, %v852_v61 }
 0x77b   :  { %v895_v59 = vmax.f32 %v893_v51, %v894_v57 }
 0x77c   :  { %v898_v3 = vadd.f32 %v890_v2, %v870_v0 }
 0x77d   :  { %v896_v31 = vrot.slane %v895_v59, 1 }
 0x77f   :  { %v897_v1 = vmax.f32 %v895_v59, %v896_v31 }
 0x781   :  { %v899_v63 = vadd.f32 %v897_v1, %v871_v55 }
 0x783   :  { %v911_v15 = vsel %vm910_vm14, %v899_v63, %v898_v3 }
 0x784   :  { %993 = vmatmul.msk.f32.vlgmr.msrb.gmra.mxu1 %vm328_vm1, %v911_v15 }
 0x801   :  { %v931_v20 = vpop.f32.mrf.mxu1 }
 0x802   :  { %v932_v4 = vadd.f32 %v1040_v32, %v931_v20 }
 0x804   :  { %934 = vst [vmem:[#allocation16] sm:$0x3] %v932_v4 }
 0x805   :  { %958 = dma.vmem_to_hbm [thread:$0]  %s954_s17, 32, %s956_s18, [#allocation17]  }
 0x806   :  { %1285 = dma.done.wait [#allocation6], 256  }
 0x807   :  { %1286 = vsyncadd [#allocation6], 4294967040 }
 0x808   :  { %1287 = dma.done.wait [#allocation17], 32  }
 0x809   :  { %1288 = vsyncadd [#allocation17], 4294967264 }
 0x80a   :  { %967 = vsyncpa [#allocation5], 1 }
 0x80b   :  { %968 = vsyncpa [#allocation8], 1 }
 0x80c   :  { %969 = vsyncpa [#allocation11], 1 }
 0x80d   :  { %970 = vsyncpa [#allocation14], 1 }
 0x80e   :  { %971 = vsyncpa [#allocation6], 1 }
 0x80f   :  { %972 = vsyncpa [#allocation17], 1 }

</bundles_post_ra>
